<compile_context>
chip_gen: v6e
topology: v6e:2x2x1
jax: 0.10.0
libtpu: 0.0.40
codegen_flags: <defaults>
</compile_context>

<pallas_src>
import functools

import numpy as np

import jax
import jax.numpy as jnp
from jax import lax
from jax.experimental import pallas as pl
from jax.experimental.pallas import tpu as pltpu


LANE = 128          # canonical lane width for every activation / weight block
KTAPS = 4           # all layers use 4x4 kernels
_ACTS = ("leaky_relu", "leaky_relu", "none", "relu", "relu", "tanh")


# ----------------------------------------------------------------------------
# Fused Pallas kernel: whole NetD forward, everything resident in VMEM.
# ----------------------------------------------------------------------------
def _apply_act(v, act):
    if act == "leaky_relu":
        return jnp.where(v > 0, v, 0.2 * v)
    if act == "relu":
        return jnp.maximum(v, 0.0)
    if act == "tanh":
        return jnp.tanh(v)
    return v


def _make_kernel(meta):
    def kernel(x_ref, l_ref, r_ref, b_ref, enc_ref, dec_ref):
        a = x_ref[...]                                    # (B*H, 128) f32, VMEM resident
        for li, m in enumerate(meta):                     # static unroll over 6 layers
            a16 = a.astype(jnp.bfloat16)                  # one cast per layer
            chunks = []
            for kh in range(KTAPS):                       # static unroll over taps
                lk = l_ref[pl.ds(m["l_off"] + kh * m["tap_pitch"], m["rows_out"]),
                           pl.ds(0, m["rows_in"])]
                # bf16 0/1 row selection (exact copies), f32 accumulate on MXU.
                sel = jnp.dot(lk, a16, preferred_element_type=jnp.float32)
                chunks.append(sel)
            # Lane-aligned concat of the 4 taps -> (rows_out, 4*128).
            gathered = jnp.concatenate(chunks, axis=1).astype(jnp.bfloat16)
            rstk = r_ref[pl.ds(m["r_off"], KTAPS * LANE), :]   # (512, 128) bf16
            out = jnp.dot(gathered, rstk, preferred_element_type=jnp.float32)
            out = out + b_ref[pl.ds(li, 1), :]            # f32 epilogue (VPU / EUP)
            a = _apply_act(out, m["act"])
            if li == 2:                                   # latent = encoder output (e3)
                enc_ref[...] = a.astype(enc_ref.dtype)
        dec_ref[...] = a.astype(dec_ref.dtype)
    return kernel


def netd_pallas(meta, x_pad, lpack, rpack, bpack):
    enc_shape = (meta[2]["rows_out"], LANE)
    dec_shape = (meta[5]["rows_out"], LANE)
    return pl.pallas_call(
        _make_kernel(meta),
        out_shape=(jax.ShapeDtypeStruct(enc_shape, jnp.float32),
                   jax.ShapeDtypeStruct(dec_shape, jnp.float32)),
        in_specs=[pl.BlockSpec(memory_space=pltpu.MemorySpace.VMEM)] * 4,
        out_specs=(pl.BlockSpec(memory_space=pltpu.MemorySpace.VMEM),
                   pl.BlockSpec(memory_space=pltpu.MemorySpace.VMEM)),
    )(x_pad, lpack, rpack, bpack)


# ----------------------------------------------------------------------------
# One-time (init) weight-layout prep:
#   conv / deconv  ->  concat_kh( L_kh @ A ) @ Rstack   in canonical
#   (B*H, W*C)-padded-to-128-lanes layout, with Rstack tap-stacked (4*128, 128).
# ----------------------------------------------------------------------------
def _conv_taps(w_hwio, B, hin, win, stride, pad):
    """Regular Conv2d (NHWC activations, HWIO weights)."""
    w = np.asarray(w_hwio, np.float32)
    K, _, cin, cout = w.shape
    ho = (hin + 2 * pad - K) // stride + 1
    wo = (win + 2 * pad - K) // stride + 1
    L = np.zeros((K, B * ho, B * hin), np.float32)
    R = np.zeros((K * LANE, LANE), np.float32)
    for kh in range(K):
        for b in range(B):
            for oh in range(ho):
                h = stride * oh + kh - pad
                if 0 <= h < hin:
                    L[kh, b * ho + oh, b * hin + h] = 1.0
        for ow in range(wo):
            for kw in range(K):
                wc = stride * ow + kw - pad
                if 0 <= wc < win:
                    R[kh * LANE + wc * cin: kh * LANE + (wc + 1) * cin,
                      ow * cout: (ow + 1) * cout] = w[kh, kw]
    return L, R, ho, wo, cout


def _deconv_taps(w_t, B, hin, win, stride, pad):
    """PyTorch ConvTranspose2d (weight (Cin, Cout, K, K), output_padding=0).
    Zero-insertion / cropping folded into the selection / weight structure."""
    w = np.asarray(w_t, np.float32)
    cin, cout, K, _ = w.shape
    ho = (hin - 1) * stride - 2 * pad + K
    wo = (win - 1) * stride - 2 * pad + K
    L = np.zeros((K, B * ho, B * hin), np.float32)
    R = np.zeros((K * LANE, LANE), np.float32)
    for kh in range(K):
        for b in range(B):
            for oh in range(ho):
                num = oh + pad - kh
                if num % stride == 0:
                    h = num // stride
                    if 0 <= h < hin:
                        L[kh, b * ho + oh, b * hin + h] = 1.0
        for ow in range(wo):
            for wc in range(win):
                kw = ow + pad - stride * wc
                if 0 <= kw < K:
                    R[kh * LANE + wc * cin: kh * LANE + (wc + 1) * cin,
                      ow * cout: (ow + 1) * cout] = w[:, :, kh, kw]
    return L, R, ho, wo, cout


def prepare_netd(params, B, H=16, W=16):
    """Data-independent GEMM-operand prep (done once, outside the jitted fwd)."""
    layer_defs = (("e1", 2, 1, False), ("e2", 2, 1, False), ("e3", 1, 0, False),
                  ("d1", 1, 0, True), ("d2", 2, 1, True), ("d3", 2, 1, True))
    l_blocks, r_blocks, b_rows, meta = [], [], [], []
    l_off = 0
    hin, win = H, W
    for li, (name, stride, pad, is_deconv) in enumerate(layer_defs):
        build = _deconv_taps if is_deconv else _conv_taps
        L, R, ho, wo, cout = build(params[name + "_w"], B, hin, win, stride, pad)
        rows_out, rows_in = B * ho, B * hin
        assert win * (R.shape[0] and 1) or True
        tap_pitch = max(16, -(-rows_out // 16) * 16)     # bf16 sublane-pack aligned
        blk = np.zeros((KTAPS * tap_pitch, rows_in), np.float32)
        for kh in range(KTAPS):
            blk[kh * tap_pitch: kh * tap_pitch + rows_out, :] = L[kh]
        l_blocks.append(blk)
        r_blocks.append(R)
        brow = np.zeros((LANE,), np.float32)
        brow[:wo * cout] = np.tile(np.asarray(params[name + "_b"], np.float32), wo)
        b_rows.append(brow)
        meta.append(dict(l_off=l_off, tap_pitch=tap_pitch, rows_out=rows_out,
                         rows_in=rows_in, r_off=li * KTAPS * LANE, act=_ACTS[li],
                         ho=ho, wo=wo, cout=cout))
        l_off += KTAPS * tap_pitch
        hin, win = ho, wo
    l_width = max(b.shape[1] for b in l_blocks)
    l_blocks = [np.pad(b, ((0, 0), (0, l_width - b.shape[1]))) for b in l_blocks]
    lpack = jnp.asarray(np.concatenate(l_blocks, axis=0), jnp.bfloat16)
    rpack = jnp.asarray(np.concatenate(r_blocks, axis=0), jnp.bfloat16)
    bpack = jnp.asarray(np.stack(b_rows, axis=0), jnp.float32)
    return lpack, rpack, bpack, meta


# ----------------------------------------------------------------------------
# Parameters (deterministic, synthetic) + NetD forward + pure-JAX reference.
# ----------------------------------------------------------------------------
def init_params(key, nc=3, nz=8, ndf=16, ngf=16):
    ks = jax.random.split(key, 12)
    scale = 0.05

    def conv_w(k, cout, cin, kh, kw):       # PyTorch Conv2d weight (O, I, kh, kw)
        w = scale * jax.random.normal(k, (cout, cin, kh, kw), jnp.float32)
        return jnp.transpose(w, (2, 3, 1, 0))  # -> HWIO

    def deconv_w(k, cin, cout, kh, kw):     # PyTorch ConvTranspose2d (I, O, kh, kw)
        return scale * jax.random.normal(k, (cin, cout, kh, kw), jnp.float32)

    def bias(k, c):
        return 0.01 * jax.random.normal(k, (c,), jnp.float32)

    return {
        # encoder: 16 -> 8 -> 4 -> 1
        "e1_w": conv_w(ks[0], ndf, nc, 4, 4),        "e1_b": bias(ks[6], ndf),
        "e2_w": conv_w(ks[1], 2 * ndf, ndf, 4, 4),   "e2_b": bias(ks[7], 2 * ndf),
        "e3_w": conv_w(ks[2], nz, 2 * ndf, 4, 4),    "e3_b": bias(ks[8], nz),
        # decoder: 1 -> 4 -> 8 -> 16
        "d1_w": deconv_w(ks[3], nz, 2 * ngf, 4, 4),  "d1_b": bias(ks[9], 2 * ngf),
        "d2_w": deconv_w(ks[4], 2 * ngf, ngf, 4, 4), "d2_b": bias(ks[10], ngf),
        "d3_w": deconv_w(ks[5], ngf, nc, 4, 4),      "d3_b": bias(ks[11], nc),
    }


def netd_forward(meta, lpack, rpack, bpack, x_nchw):
    B, C, H, W = x_nchw.shape
    x_can = jnp.transpose(x_nchw, (0, 2, 3, 1)).reshape(B * H, W * C)   # NCHW -> (B*H, W*C)
    x_pad = jnp.pad(x_can.astype(jnp.float32), ((0, 0), (0, LANE - W * C)))
    enc, dec = netd_pallas(meta, x_pad, lpack, rpack, bpack)
    # NetD.forward: flatten both with PyTorch NCHW element ordering.
    m_enc, m_dec = meta[2], meta[5]
    nz = m_enc["wo"] * m_enc["cout"]
    f_enc = enc[:, :nz].reshape(B, -1)            # latent is 1x1 spatial -> channel order
    hd, wd, cd = m_dec["ho"], m_dec["wo"], m_dec["cout"]
    dec_nhwc = dec[:, :wd * cd].reshape(B, hd, wd, cd)
    f_dec = jnp.transpose(dec_nhwc, (0, 3, 1, 2)).reshape(B, -1)
    return f_enc, f_dec


def reference_forward(params, x_nchw):
    """Pure-JAX (lax.conv) reference with identical semantics, for validation."""
    dn = ("NHWC", "HWIO", "NHWC")

    def conv(x, w_hwio, b, s, p):
        y = lax.conv_general_dilated(x, w_hwio, (s, s), [(p, p), (p, p)],
                                     dimension_numbers=dn)
        return y + b

    def deconv(x, w_t, b, s, p):
        K = w_t.shape[2]
        w_hwio = jnp.transpose(w_t[:, :, ::-1, ::-1], (2, 3, 0, 1))
        y = lax.conv_general_dilated(x, w_hwio, (1, 1), [(K - 1 - p,) * 2] * 2,
                                     lhs_dilation=(s, s), dimension_numbers=dn)
        return y + b

    lrelu = lambda v: jnp.where(v > 0, v, 0.2 * v)
    x = jnp.transpose(x_nchw, (0, 2, 3, 1))
    h = lrelu(conv(x, params["e1_w"], params["e1_b"], 2, 1))
    h = lrelu(conv(h, params["e2_w"], params["e2_b"], 2, 1))
    enc = conv(h, params["e3_w"], params["e3_b"], 1, 0)
    g = jnp.maximum(deconv(enc, params["d1_w"], params["d1_b"], 1, 0), 0.0)
    g = jnp.maximum(deconv(g, params["d2_w"], params["d2_b"], 2, 1), 0.0)
    dec = jnp.tanh(deconv(g, params["d3_w"], params["d3_b"], 2, 1))
    B = x_nchw.shape[0]
    f_enc = jnp.transpose(enc, (0, 3, 1, 2)).reshape(B, -1)
    f_dec = jnp.transpose(dec, (0, 3, 1, 2)).reshape(B, -1)
    return f_enc, f_dec


if __name__ == "__main__":
    key = jax.random.PRNGKey(0)
    k_param, k_data = jax.random.split(key)

    B, C, H, W = 2, 3, 16, 16
    x = jax.random.normal(k_data, (B, C, H, W), jnp.float32)      # NCHW input
    params = init_params(k_param, nc=C, nz=8, ndf=16, ngf=16)
    lpack, rpack, bpack, meta = prepare_netd(params, B, H, W)     # one-time weight prep

    fwd = jax.jit(functools.partial(netd_forward, meta))
    f_enc, f_dec = fwd(lpack, rpack, bpack, x)
    jax.block_until_ready((f_enc, f_dec))

    assert f_enc.shape == (B, 8), f_enc.shape
    assert f_dec.shape == (B, C * H * W), f_dec.shape
    assert bool(jnp.all(jnp.isfinite(f_enc))) and bool(jnp.all(jnp.isfinite(f_dec)))

    # Validate the fused kernel against the pure-JAX reference (loose tolerance:
    # the kernel uses bf16 MXU operands with f32 accumulation).
    r_enc, r_dec = reference_forward(params, x)
    assert float(jnp.max(jnp.abs(f_enc - r_enc))) < 5e-2, float(jnp.max(jnp.abs(f_enc - r_enc)))
    assert float(jnp.max(jnp.abs(f_dec - r_dec))) < 5e-2, float(jnp.max(jnp.abs(f_dec - r_dec)))

    print("KERNEL_OK")
</pallas_src>

<mosaic_0001>
module attributes {stable_mosaic.version = 11 : i64} {
  func.func @kernel(%arg0: memref<32x128xf32, #tpu.memory_space<vmem>>, %arg1: memref<448x32xbf16, #tpu.memory_space<vmem>>, %arg2: memref<3072x128xbf16, #tpu.memory_space<vmem>>, %arg3: memref<6x128xf32, #tpu.memory_space<vmem>>, %arg4: memref<2x128xf32, #tpu.memory_space<vmem>>, %arg5: memref<32x128xf32, #tpu.memory_space<vmem>>) attributes {dimension_semantics = [], scalar_prefetch = 0 : i64, scratch_operands = 0 : i64, tpu.core_type = #tpu.core_type<tc>} {
    %c0 = arith.constant 0 : index
    %c0_0 = arith.constant 0 : index
    %0 = vector.load %arg0[%c0, %c0_0] : memref<32x128xf32, #tpu.memory_space<vmem>>, vector<32x128xf32>
    %1 = arith.truncf %0 : vector<32x128xf32> to vector<32x128xbf16>
    %c0_1 = arith.constant 0 : index
    %c0_2 = arith.constant 0 : index
    %2 = vector.load %arg1[%c0_1, %c0_2] : memref<448x32xbf16, #tpu.memory_space<vmem>>, vector<16x32xbf16>
    %cst = arith.constant dense<0.000000e+00> : vector<16x128xf32>
    %3 = tpu.matmul %2, %1, %cst {dimension_numbers = #tpu.dot_dimension_numbers<[1], [0], [0], [1], [0, 0, 1, 1], [], []>} : vector<16x32xbf16>, vector<32x128xbf16>, vector<16x128xf32> -> vector<16x128xf32>
    %c16 = arith.constant 16 : index
    %c0_3 = arith.constant 0 : index
    %4 = vector.load %arg1[%c16, %c0_3] : memref<448x32xbf16, #tpu.memory_space<vmem>>, vector<16x32xbf16>
    %cst_4 = arith.constant dense<0.000000e+00> : vector<16x128xf32>
    %5 = tpu.matmul %4, %1, %cst_4 {dimension_numbers = #tpu.dot_dimension_numbers<[1], [0], [0], [1], [0, 0, 1, 1], [], []>} : vector<16x32xbf16>, vector<32x128xbf16>, vector<16x128xf32> -> vector<16x128xf32>
    %c32 = arith.constant 32 : index
    %c0_5 = arith.constant 0 : index
    %6 = vector.load %arg1[%c32, %c0_5] : memref<448x32xbf16, #tpu.memory_space<vmem>>, vector<16x32xbf16>
    %cst_6 = arith.constant dense<0.000000e+00> : vector<16x128xf32>
    %7 = tpu.matmul %6, %1, %cst_6 {dimension_numbers = #tpu.dot_dimension_numbers<[1], [0], [0], [1], [0, 0, 1, 1], [], []>} : vector<16x32xbf16>, vector<32x128xbf16>, vector<16x128xf32> -> vector<16x128xf32>
    %c48 = arith.constant 48 : index
    %c0_7 = arith.constant 0 : index
    %8 = vector.load %arg1[%c48, %c0_7] : memref<448x32xbf16, #tpu.memory_space<vmem>>, vector<16x32xbf16>
    %cst_8 = arith.constant dense<0.000000e+00> : vector<16x128xf32>
    %9 = tpu.matmul %8, %1, %cst_8 {dimension_numbers = #tpu.dot_dimension_numbers<[1], [0], [0], [1], [0, 0, 1, 1], [], []>} : vector<16x32xbf16>, vector<32x128xbf16>, vector<16x128xf32> -> vector<16x128xf32>
    %10 = tpu.concatenate %3, %5, %7, %9 in 1 : vector<16x128xf32>, vector<16x128xf32>, vector<16x128xf32>, vector<16x128xf32> -> vector<16x512xf32>
    %11 = arith.truncf %10 : vector<16x512xf32> to vector<16x512xbf16>
    %c0_9 = arith.constant 0 : index
    %c0_10 = arith.constant 0 : index
    %12 = vector.load %arg2[%c0_9, %c0_10] : memref<3072x128xbf16, #tpu.memory_space<vmem>>, vector<512x128xbf16>
    %cst_11 = arith.constant dense<0.000000e+00> : vector<16x128xf32>
    %13 = tpu.matmul %11, %12, %cst_11 {dimension_numbers = #tpu.dot_dimension_numbers<[1], [0], [0], [1], [0, 0, 1, 1], [], []>} : vector<16x512xbf16>, vector<512x128xbf16>, vector<16x128xf32> -> vector<16x128xf32>
    %c0_12 = arith.constant 0 : index
    %c0_13 = arith.constant 0 : index
    %14 = vector.load %arg3[%c0_12, %c0_13] : memref<6x128xf32, #tpu.memory_space<vmem>>, vector<1x128xf32>
    %15 = vector.broadcast %14 : vector<1x128xf32> to vector<16x128xf32>
    %16 = arith.addf %13, %15 : vector<16x128xf32>
    %cst_14 = arith.constant 0.000000e+00 : f32
    %17 = vector.broadcast %cst_14 : f32 to vector<16x128xf32>
    %18 = arith.cmpf ogt, %16, %17 : vector<16x128xf32>
    %cst_15 = arith.constant 2.000000e-01 : f32
    %19 = vector.broadcast %cst_15 : f32 to vector<16x128xf32>
    %20 = arith.mulf %19, %16 : vector<16x128xf32>
    %21 = arith.select %18, %16, %20 : vector<16x128xi1>, vector<16x128xf32>
    %22 = arith.truncf %21 : vector<16x128xf32> to vector<16x128xbf16>
    %c64 = arith.constant 64 : index
    %c0_16 = arith.constant 0 : index
    %23 = vector.load %arg1[%c64, %c0_16] : memref<448x32xbf16, #tpu.memory_space<vmem>>, vector<8x16xbf16>
    %cst_17 = arith.constant dense<0.000000e+00> : vector<8x128xf32>
    %24 = tpu.matmul %23, %22, %cst_17 {dimension_numbers = #tpu.dot_dimension_numbers<[1], [0], [0], [1], [0, 0, 1, 1], [], []>} : vector<8x16xbf16>, vector<16x128xbf16>, vector<8x128xf32> -> vector<8x128xf32>
    %c80 = arith.constant 80 : index
    %c0_18 = arith.constant 0 : index
    %25 = vector.load %arg1[%c80, %c0_18] : memref<448x32xbf16, #tpu.memory_space<vmem>>, vector<8x16xbf16>
    %cst_19 = arith.constant dense<0.000000e+00> : vector<8x128xf32>
    %26 = tpu.matmul %25, %22, %cst_19 {dimension_numbers = #tpu.dot_dimension_numbers<[1], [0], [0], [1], [0, 0, 1, 1], [], []>} : vector<8x16xbf16>, vector<16x128xbf16>, vector<8x128xf32> -> vector<8x128xf32>
    %c96 = arith.constant 96 : index
    %c0_20 = arith.constant 0 : index
    %27 = vector.load %arg1[%c96, %c0_20] : memref<448x32xbf16, #tpu.memory_space<vmem>>, vector<8x16xbf16>
    %cst_21 = arith.constant dense<0.000000e+00> : vector<8x128xf32>
    %28 = tpu.matmul %27, %22, %cst_21 {dimension_numbers = #tpu.dot_dimension_numbers<[1], [0], [0], [1], [0, 0, 1, 1], [], []>} : vector<8x16xbf16>, vector<16x128xbf16>, vector<8x128xf32> -> vector<8x128xf32>
    %c112 = arith.constant 112 : index
    %c0_22 = arith.constant 0 : index
    %29 = vector.load %arg1[%c112, %c0_22] : memref<448x32xbf16, #tpu.memory_space<vmem>>, vector<8x16xbf16>
    %cst_23 = arith.constant dense<0.000000e+00> : vector<8x128xf32>
    %30 = tpu.matmul %29, %22, %cst_23 {dimension_numbers = #tpu.dot_dimension_numbers<[1], [0], [0], [1], [0, 0, 1, 1], [], []>} : vector<8x16xbf16>, vector<16x128xbf16>, vector<8x128xf32> -> vector<8x128xf32>
    %31 = tpu.concatenate %24, %26, %28, %30 in 1 : vector<8x128xf32>, vector<8x128xf32>, vector<8x128xf32>, vector<8x128xf32> -> vector<8x512xf32>
    %32 = arith.truncf %31 : vector<8x512xf32> to vector<8x512xbf16>
    %c512 = arith.constant 512 : index
    %c0_24 = arith.constant 0 : index
    %33 = vector.load %arg2[%c512, %c0_24] : memref<3072x128xbf16, #tpu.memory_space<vmem>>, vector<512x128xbf16>
    %cst_25 = arith.constant dense<0.000000e+00> : vector<8x128xf32>
    %34 = tpu.matmul %32, %33, %cst_25 {dimension_numbers = #tpu.dot_dimension_numbers<[1], [0], [0], [1], [0, 0, 1, 1], [], []>} : vector<8x512xbf16>, vector<512x128xbf16>, vector<8x128xf32> -> vector<8x128xf32>
    %c1 = arith.constant 1 : index
    %c0_26 = arith.constant 0 : index
    %35 = vector.load %arg3[%c1, %c0_26] : memref<6x128xf32, #tpu.memory_space<vmem>>, vector<1x128xf32>
    %36 = vector.broadcast %35 : vector<1x128xf32> to vector<8x128xf32>
    %37 = arith.addf %34, %36 : vector<8x128xf32>
    %cst_27 = arith.constant 0.000000e+00 : f32
    %38 = vector.broadcast %cst_27 : f32 to vector<8x128xf32>
    %39 = arith.cmpf ogt, %37, %38 : vector<8x128xf32>
    %cst_28 = arith.constant 2.000000e-01 : f32
    %40 = vector.broadcast %cst_28 : f32 to vector<8x128xf32>
    %41 = arith.mulf %40, %37 : vector<8x128xf32>
    %42 = arith.select %39, %37, %41 : vector<8x128xi1>, vector<8x128xf32>
    %43 = arith.truncf %42 : vector<8x128xf32> to vector<8x128xbf16>
    %c128 = arith.constant 128 : index
    %c0_29 = arith.constant 0 : index
    %44 = vector.load %arg1[%c128, %c0_29] : memref<448x32xbf16, #tpu.memory_space<vmem>>, vector<2x8xbf16>
    %cst_30 = arith.constant dense<0.000000e+00> : vector<2x128xf32>
    %45 = tpu.matmul %44, %43, %cst_30 {dimension_numbers = #tpu.dot_dimension_numbers<[1], [0], [0], [1], [0, 0, 1, 1], [], []>} : vector<2x8xbf16>, vector<8x128xbf16>, vector<2x128xf32> -> vector<2x128xf32>
    %c144 = arith.constant 144 : index
    %c0_31 = arith.constant 0 : index
    %46 = vector.load %arg1[%c144, %c0_31] : memref<448x32xbf16, #tpu.memory_space<vmem>>, vector<2x8xbf16>
    %cst_32 = arith.constant dense<0.000000e+00> : vector<2x128xf32>
    %47 = tpu.matmul %46, %43, %cst_32 {dimension_numbers = #tpu.dot_dimension_numbers<[1], [0], [0], [1], [0, 0, 1, 1], [], []>} : vector<2x8xbf16>, vector<8x128xbf16>, vector<2x128xf32> -> vector<2x128xf32>
    %c160 = arith.constant 160 : index
    %c0_33 = arith.constant 0 : index
    %48 = vector.load %arg1[%c160, %c0_33] : memref<448x32xbf16, #tpu.memory_space<vmem>>, vector<2x8xbf16>
    %cst_34 = arith.constant dense<0.000000e+00> : vector<2x128xf32>
    %49 = tpu.matmul %48, %43, %cst_34 {dimension_numbers = #tpu.dot_dimension_numbers<[1], [0], [0], [1], [0, 0, 1, 1], [], []>} : vector<2x8xbf16>, vector<8x128xbf16>, vector<2x128xf32> -> vector<2x128xf32>
    %c176 = arith.constant 176 : index
    %c0_35 = arith.constant 0 : index
    %50 = vector.load %arg1[%c176, %c0_35] : memref<448x32xbf16, #tpu.memory_space<vmem>>, vector<2x8xbf16>
    %cst_36 = arith.constant dense<0.000000e+00> : vector<2x128xf32>
    %51 = tpu.matmul %50, %43, %cst_36 {dimension_numbers = #tpu.dot_dimension_numbers<[1], [0], [0], [1], [0, 0, 1, 1], [], []>} : vector<2x8xbf16>, vector<8x128xbf16>, vector<2x128xf32> -> vector<2x128xf32>
    %52 = tpu.concatenate %45, %47, %49, %51 in 1 : vector<2x128xf32>, vector<2x128xf32>, vector<2x128xf32>, vector<2x128xf32> -> vector<2x512xf32>
    %53 = arith.truncf %52 : vector<2x512xf32> to vector<2x512xbf16>
    %c1024 = arith.constant 1024 : index
    %c0_37 = arith.constant 0 : index
    %54 = vector.load %arg2[%c1024, %c0_37] : memref<3072x128xbf16, #tpu.memory_space<vmem>>, vector<512x128xbf16>
    %cst_38 = arith.constant dense<0.000000e+00> : vector<2x128xf32>
    %55 = tpu.matmul %53, %54, %cst_38 {dimension_numbers = #tpu.dot_dimension_numbers<[1], [0], [0], [1], [0, 0, 1, 1], [], []>} : vector<2x512xbf16>, vector<512x128xbf16>, vector<2x128xf32> -> vector<2x128xf32>
    %c2 = arith.constant 2 : index
    %c0_39 = arith.constant 0 : index
    %56 = vector.load %arg3[%c2, %c0_39] : memref<6x128xf32, #tpu.memory_space<vmem>>, vector<1x128xf32>
    %57 = vector.broadcast %56 : vector<1x128xf32> to vector<2x128xf32>
    %58 = arith.addf %55, %57 : vector<2x128xf32>
    %c0_40 = arith.constant 0 : index
    %c0_41 = arith.constant 0 : index
    %59 = vector.load %arg4[%c0_40, %c0_41] : memref<2x128xf32, #tpu.memory_space<vmem>>, vector<2x128xf32>
    tpu.vector_store %arg4[%c0_40, %c0_41], %58 {strides = array<i32>} : memref<2x128xf32, #tpu.memory_space<vmem>>, vector<2x128xf32>,
    %60 = arith.truncf %58 : vector<2x128xf32> to vector<2x128xbf16>
    %c192 = arith.constant 192 : index
    %c0_42 = arith.constant 0 : index
    %61 = vector.load %arg1[%c192, %c0_42] : memref<448x32xbf16, #tpu.memory_space<vmem>>, vector<8x2xbf16>
    %cst_43 = arith.constant dense<0.000000e+00> : vector<8x128xf32>
    %62 = tpu.matmul %61, %60, %cst_43 {dimension_numbers = #tpu.dot_dimension_numbers<[1], [0], [0], [1], [0, 0, 1, 1], [], []>} : vector<8x2xbf16>, vector<2x128xbf16>, vector<8x128xf32> -> vector<8x128xf32>
    %c208 = arith.constant 208 : index
    %c0_44 = arith.constant 0 : index
    %63 = vector.load %arg1[%c208, %c0_44] : memref<448x32xbf16, #tpu.memory_space<vmem>>, vector<8x2xbf16>
    %cst_45 = arith.constant dense<0.000000e+00> : vector<8x128xf32>
    %64 = tpu.matmul %63, %60, %cst_45 {dimension_numbers = #tpu.dot_dimension_numbers<[1], [0], [0], [1], [0, 0, 1, 1], [], []>} : vector<8x2xbf16>, vector<2x128xbf16>, vector<8x128xf32> -> vector<8x128xf32>
    %c224 = arith.constant 224 : index
    %c0_46 = arith.constant 0 : index
    %65 = vector.load %arg1[%c224, %c0_46] : memref<448x32xbf16, #tpu.memory_space<vmem>>, vector<8x2xbf16>
    %cst_47 = arith.constant dense<0.000000e+00> : vector<8x128xf32>
    %66 = tpu.matmul %65, %60, %cst_47 {dimension_numbers = #tpu.dot_dimension_numbers<[1], [0], [0], [1], [0, 0, 1, 1], [], []>} : vector<8x2xbf16>, vector<2x128xbf16>, vector<8x128xf32> -> vector<8x128xf32>
    %c240 = arith.constant 240 : index
    %c0_48 = arith.constant 0 : index
    %67 = vector.load %arg1[%c240, %c0_48] : memref<448x32xbf16, #tpu.memory_space<vmem>>, vector<8x2xbf16>
    %cst_49 = arith.constant dense<0.000000e+00> : vector<8x128xf32>
    %68 = tpu.matmul %67, %60, %cst_49 {dimension_numbers = #tpu.dot_dimension_numbers<[1], [0], [0], [1], [0, 0, 1, 1], [], []>} : vector<8x2xbf16>, vector<2x128xbf16>, vector<8x128xf32> -> vector<8x128xf32>
    %69 = tpu.concatenate %62, %64, %66, %68 in 1 : vector<8x128xf32>, vector<8x128xf32>, vector<8x128xf32>, vector<8x128xf32> -> vector<8x512xf32>
    %70 = arith.truncf %69 : vector<8x512xf32> to vector<8x512xbf16>
    %c1536 = arith.constant 1536 : index
    %c0_50 = arith.constant 0 : index
    %71 = vector.load %arg2[%c1536, %c0_50] : memref<3072x128xbf16, #tpu.memory_space<vmem>>, vector<512x128xbf16>
    %cst_51 = arith.constant dense<0.000000e+00> : vector<8x128xf32>
    %72 = tpu.matmul %70, %71, %cst_51 {dimension_numbers = #tpu.dot_dimension_numbers<[1], [0], [0], [1], [0, 0, 1, 1], [], []>} : vector<8x512xbf16>, vector<512x128xbf16>, vector<8x128xf32> -> vector<8x128xf32>
    %c3 = arith.constant 3 : index
    %c0_52 = arith.constant 0 : index
    %73 = vector.load %arg3[%c3, %c0_52] : memref<6x128xf32, #tpu.memory_space<vmem>>, vector<1x128xf32>
    %74 = vector.broadcast %73 : vector<1x128xf32> to vector<8x128xf32>
    %75 = arith.addf %72, %74 : vector<8x128xf32>
    %cst_53 = arith.constant 0.000000e+00 : f32
    %76 = vector.broadcast %cst_53 : f32 to vector<8x128xf32>
    %77 = arith.maximumf %75, %76 : vector<8x128xf32>
    %78 = arith.truncf %77 : vector<8x128xf32> to vector<8x128xbf16>
    %c256 = arith.constant 256 : index
    %c0_54 = arith.constant 0 : index
    %79 = vector.load %arg1[%c256, %c0_54] : memref<448x32xbf16, #tpu.memory_space<vmem>>, vector<16x8xbf16>
    %cst_55 = arith.constant dense<0.000000e+00> : vector<16x128xf32>
    %80 = tpu.matmul %79, %78, %cst_55 {dimension_numbers = #tpu.dot_dimension_numbers<[1], [0], [0], [1], [0, 0, 1, 1], [], []>} : vector<16x8xbf16>, vector<8x128xbf16>, vector<16x128xf32> -> vector<16x128xf32>
    %c272 = arith.constant 272 : index
    %c0_56 = arith.constant 0 : index
    %81 = vector.load %arg1[%c272, %c0_56] : memref<448x32xbf16, #tpu.memory_space<vmem>>, vector<16x8xbf16>
    %cst_57 = arith.constant dense<0.000000e+00> : vector<16x128xf32>
    %82 = tpu.matmul %81, %78, %cst_57 {dimension_numbers = #tpu.dot_dimension_numbers<[1], [0], [0], [1], [0, 0, 1, 1], [], []>} : vector<16x8xbf16>, vector<8x128xbf16>, vector<16x128xf32> -> vector<16x128xf32>
    %c288 = arith.constant 288 : index
    %c0_58 = arith.constant 0 : index
    %83 = vector.load %arg1[%c288, %c0_58] : memref<448x32xbf16, #tpu.memory_space<vmem>>, vector<16x8xbf16>
    %cst_59 = arith.constant dense<0.000000e+00> : vector<16x128xf32>
    %84 = tpu.matmul %83, %78, %cst_59 {dimension_numbers = #tpu.dot_dimension_numbers<[1], [0], [0], [1], [0, 0, 1, 1], [], []>} : vector<16x8xbf16>, vector<8x128xbf16>, vector<16x128xf32> -> vector<16x128xf32>
    %c304 = arith.constant 304 : index
    %c0_60 = arith.constant 0 : index
    %85 = vector.load %arg1[%c304, %c0_60] : memref<448x32xbf16, #tpu.memory_space<vmem>>, vector<16x8xbf16>
    %cst_61 = arith.constant dense<0.000000e+00> : vector<16x128xf32>
    %86 = tpu.matmul %85, %78, %cst_61 {dimension_numbers = #tpu.dot_dimension_numbers<[1], [0], [0], [1], [0, 0, 1, 1], [], []>} : vector<16x8xbf16>, vector<8x128xbf16>, vector<16x128xf32> -> vector<16x128xf32>
    %87 = tpu.concatenate %80, %82, %84, %86 in 1 : vector<16x128xf32>, vector<16x128xf32>, vector<16x128xf32>, vector<16x128xf32> -> vector<16x512xf32>
    %88 = arith.truncf %87 : vector<16x512xf32> to vector<16x512xbf16>
    %c2048 = arith.constant 2048 : index
    %c0_62 = arith.constant 0 : index
    %89 = vector.load %arg2[%c2048, %c0_62] : memref<3072x128xbf16, #tpu.memory_space<vmem>>, vector<512x128xbf16>
    %cst_63 = arith.constant dense<0.000000e+00> : vector<16x128xf32>
    %90 = tpu.matmul %88, %89, %cst_63 {dimension_numbers = #tpu.dot_dimension_numbers<[1], [0], [0], [1], [0, 0, 1, 1], [], []>} : vector<16x512xbf16>, vector<512x128xbf16>, vector<16x128xf32> -> vector<16x128xf32>
    %c4 = arith.constant 4 : index
    %c0_64 = arith.constant 0 : index
    %91 = vector.load %arg3[%c4, %c0_64] : memref<6x128xf32, #tpu.memory_space<vmem>>, vector<1x128xf32>
    %92 = vector.broadcast %91 : vector<1x128xf32> to vector<16x128xf32>
    %93 = arith.addf %90, %92 : vector<16x128xf32>
    %cst_65 = arith.constant 0.000000e+00 : f32
    %94 = vector.broadcast %cst_65 : f32 to vector<16x128xf32>
    %95 = arith.maximumf %93, %94 : vector<16x128xf32>
    %96 = arith.truncf %95 : vector<16x128xf32> to vector<16x128xbf16>
    %c320 = arith.constant 320 : index
    %c0_66 = arith.constant 0 : index
    %97 = vector.load %arg1[%c320, %c0_66] : memref<448x32xbf16, #tpu.memory_space<vmem>>, vector<32x16xbf16>
    %cst_67 = arith.constant dense<0.000000e+00> : vector<32x128xf32>
    %98 = tpu.matmul %97, %96, %cst_67 {dimension_numbers = #tpu.dot_dimension_numbers<[1], [0], [0], [1], [0, 0, 1, 1], [], []>} : vector<32x16xbf16>, vector<16x128xbf16>, vector<32x128xf32> -> vector<32x128xf32>
    %c352 = arith.constant 352 : index
    %c0_68 = arith.constant 0 : index
    %99 = vector.load %arg1[%c352, %c0_68] : memref<448x32xbf16, #tpu.memory_space<vmem>>, vector<32x16xbf16>
    %cst_69 = arith.constant dense<0.000000e+00> : vector<32x128xf32>
    %100 = tpu.matmul %99, %96, %cst_69 {dimension_numbers = #tpu.dot_dimension_numbers<[1], [0], [0], [1], [0, 0, 1, 1], [], []>} : vector<32x16xbf16>, vector<16x128xbf16>, vector<32x128xf32> -> vector<32x128xf32>
    %c384 = arith.constant 384 : index
    %c0_70 = arith.constant 0 : index
    %101 = vector.load %arg1[%c384, %c0_70] : memref<448x32xbf16, #tpu.memory_space<vmem>>, vector<32x16xbf16>
    %cst_71 = arith.constant dense<0.000000e+00> : vector<32x128xf32>
    %102 = tpu.matmul %101, %96, %cst_71 {dimension_numbers = #tpu.dot_dimension_numbers<[1], [0], [0], [1], [0, 0, 1, 1], [], []>} : vector<32x16xbf16>, vector<16x128xbf16>, vector<32x128xf32> -> vector<32x128xf32>
    %c416 = arith.constant 416 : index
    %c0_72 = arith.constant 0 : index
    %103 = vector.load %arg1[%c416, %c0_72] : memref<448x32xbf16, #tpu.memory_space<vmem>>, vector<32x16xbf16>
    %cst_73 = arith.constant dense<0.000000e+00> : vector<32x128xf32>
    %104 = tpu.matmul %103, %96, %cst_73 {dimension_numbers = #tpu.dot_dimension_numbers<[1], [0], [0], [1], [0, 0, 1, 1], [], []>} : vector<32x16xbf16>, vector<16x128xbf16>, vector<32x128xf32> -> vector<32x128xf32>
    %105 = tpu.concatenate %98, %100, %102, %104 in 1 : vector<32x128xf32>, vector<32x128xf32>, vector<32x128xf32>, vector<32x128xf32> -> vector<32x512xf32>
    %106 = arith.truncf %105 : vector<32x512xf32> to vector<32x512xbf16>
    %c2560 = arith.constant 2560 : index
    %c0_74 = arith.constant 0 : index
    %107 = vector.load %arg2[%c2560, %c0_74] : memref<3072x128xbf16, #tpu.memory_space<vmem>>, vector<512x128xbf16>
    %cst_75 = arith.constant dense<0.000000e+00> : vector<32x128xf32>
    %108 = tpu.matmul %106, %107, %cst_75 {dimension_numbers = #tpu.dot_dimension_numbers<[1], [0], [0], [1], [0, 0, 1, 1], [], []>} : vector<32x512xbf16>, vector<512x128xbf16>, vector<32x128xf32> -> vector<32x128xf32>
    %c5 = arith.constant 5 : index
    %c0_76 = arith.constant 0 : index
    %109 = vector.load %arg3[%c5, %c0_76] : memref<6x128xf32, #tpu.memory_space<vmem>>, vector<1x128xf32>
    %110 = vector.broadcast %109 : vector<1x128xf32> to vector<32x128xf32>
    %111 = arith.addf %108, %110 : vector<32x128xf32>
    %112 = math.tanh %111 : vector<32x128xf32>
    %c0_77 = arith.constant 0 : index
    %c0_78 = arith.constant 0 : index
    %113 = vector.load %arg5[%c0_77, %c0_78] : memref<32x128xf32, #tpu.memory_space<vmem>>, vector<32x128xf32>
    tpu.vector_store %arg5[%c0_77, %c0_78], %112 {strides = array<i32>} : memref<32x128xf32, #tpu.memory_space<vmem>>, vector<32x128xf32>,
    return
  }
}

</mosaic_0001>

<bundles_post_ra>
// kernel: netd_forward.1
= control target key start
LH: loop header
LB: loop body
LE: loop exit
PB: predicated region body
PF: predicated region fallthrough
CT: control target
= control target key end

     0   :  { %11 = vsyncpa [#allocation3], 0  ;;  %s4663_s0 = inlined_call_operand.vmem [shape: f32[32,128], index: 0, kind: input, shape index: {}]   ;;  %s4664_s1 = inlined_call_operand.vmem [shape: bf16[448,32], index: 1, kind: input, shape index: {}]   ;;  %s4665_s2 = inlined_call_operand.hbm [shape: bf16[3072,128], index: 2, kind: input, shape index: {}]   ;;  %s4666_s3 = inlined_call_operand.vmem [shape: f32[6,128], index: 3, kind: input, shape index: {}]   ;;  %s4667_s4 = inlined_call_operand.hbm [shape: f32[2,128], index: 4, kind: output, shape index: {0}]   ;;  %s4668_s5 = inlined_call_operand.vmem [shape: f32[32,128], index: 5, kind: output, shape index: {1}]  }
   0x1   :  { %12 = vsyncpa [#allocation4], 0  ;;  %s4401_s18 = smov [#allocation2]  }
   0x2   :  { %s22_s19 = sshll.u32 %s4401_s18, 4  ;;  %s23_s19 = int_to_ptr.vmem [resolvable:$true] %s22_s19 }
   0x3   :  { %s4365_s20 = scalar_lea.vmem %s23_s19, 24576  ;;  %p4370_p1 = scmp.lt.s32.totalorder %s23_s19, %s23_s19 }
   0x4   :  { %p4366_p0 = scmp.ne.s32.totalorder %s23_s19, %s4365_s20  ;;  %p4371_p2 = scmp.lt.s32.totalorder %s4365_s20, %s4365_s20 }
   0x6   :  { %p4372_p3 = por %p4371_p2, %p4370_p1 }
   0x8   :  { %p4373_p4 = pnand %p4372_p3, %p4366_p0 }
   0xa   :  { %4376 = shalt.err (!%p4373_p4)
}
   0xb   :  { %s4402_s21 = smov 64   ;;  %s4403_s22 = smov 4  }
   0xc   :  { %28 = dma.hbm_to_vmem [thread:$0]  %s4665_s2, 24576, %s23_s19, [#allocation3], %s4402_s21, %s4402_s21, %s4403_s22  }
   0xd   :  { %4397 = dma.done.wait [#allocation3], 24576  }
   0xe   :  { %4398 = vsyncadd [#allocation3], 4294942720  ;;  %v4404_v0 = vmov 0.0   ;;  %vm4405_vm0 = vmmov 0   ;;  %v37_v1 = vld [vmem:[%s4663_s0 + $0x10] sm:$0xff]  ;;  %v38_v2 = vld [vmem:[%s4663_s0 + $0x18] sm:$0xff] }
   0xf   :  { %3983 = vmatprep.subr.bf16.mxu0 %v4404_v0  ;;  %3991 = vmatprep.subr.bf16.mxu1 %v4404_v0  ;;  %v35_v3 = vld [vmem:[%s4663_s0] sm:$0xff]  ;;  %v40_v4 = vpack.c.bf16 %v38_v2, %v37_v1  ;;  %v36_v5 = vld [vmem:[%s4663_s0 + $0x8] sm:$0xff]  ;;  %vm48_vm1 = vcmask 261120   ;;  %v4145_v9 = vld [vmem:[#allocation2 + $0x78] sm:$0xff]   ;;  %vm601_vm4 = vcmask 130048   ;;  %vm1131_vm6 = vcmask 1043456  }
  0x10   :  { %3987 = vmatprep.mubr.msk.bf16.mxu0 %vm4405_vm0, %v4404_v0  ;;  %3995 = vmatprep.mubr.msk.bf16.mxu1 %vm4405_vm0, %v4404_v0  ;;  %v39_v6 = vpack.c.bf16 %v36_v5, %v35_v3  ;;  %v4141_v7 = vld [vmem:[%s4664_s1] sm:$0xff]   ;;  %v4142_v8 = vld [vmem:[%s4664_s1 + $0x8] sm:$0xff]   ;;  %v4143_v10 = vld [vmem:[%s4664_s1 + $0x10] sm:$0xff]   ;;  %vm1127_vm7 = vcmask 64512   ;;  %vm1659_vm8 = vcmask 1040384   ;;  %vm1655_vm9 = vcmask 15360  }
  0x11   :  { %3984 = vmatpush3.bf16.msra.mxu0 %v40_v4  ;;  %3992 = vmatpush3.bf16.msra.mxu1 %v40_v4  ;;  %v4144_v11 = vld [vmem:[%s4664_s1 + $0x18] sm:$0xff]   ;;  %v4147_v14 = vld [vmem:[#allocation2 + $0x70] sm:$0xff]   ;;  %v4149_v18 = vld [vmem:[#allocation2 + $0x68] sm:$0xff]  }
  0x12   :  { %3985 = vmatprep.subr.bf16.mxu0 %v4404_v0  ;;  %3993 = vmatprep.subr.bf16.mxu1 %v4404_v0  ;;  %v4150_v12 = vld [vmem:[#allocation2 + $0xf8] sm:$0xff]   ;;  %v4154_v16 = vld [vmem:[#allocation2 + $0xf0] sm:$0xff]   ;;  %v4158_v20 = vld [vmem:[#allocation2 + $0xe8] sm:$0xff]  }
  0x13   :  { %v4146_v13 = vld [vmem:[#allocation2 + $0x38] sm:$0xff]   ;;  %v4148_v17 = vld [vmem:[#allocation2 + $0x30] sm:$0xff]   ;;  %v4151_v21 = vld [vmem:[#allocation2 + $0x28] sm:$0xff]  }
  0x14   :  { %v4152_v15 = vld [vmem:[#allocation2 + $0xb8] sm:$0xff]   ;;  %v4156_v19 = vld [vmem:[#allocation2 + $0xb0] sm:$0xff]   ;;  %v4153_v22 = vld [vmem:[#allocation2 + $0x60] sm:$0xff]  }
  0x15   :  { %3986 = vmatpush3.bf16.msra.mxu0 %v39_v6  ;;  %3994 = vmatpush3.bf16.msra.mxu1 %v39_v6  ;;  %v4160_v23 = vld [vmem:[#allocation2 + $0xa8] sm:$0xff]   ;;  %v4162_v24 = vld [vmem:[#allocation2 + $0xe0] sm:$0xff]   ;;  %v4157_v27 = vld [vmem:[#allocation2 + $0x58] sm:$0xff]  }
  0x16   :  { %3999 = vmatprep.subr.bf16.mxu0 %v4404_v0  ;;  %4007 = vmatprep.subr.bf16.mxu1 %v4404_v0  ;;  %v4155_v25 = vld [vmem:[#allocation2 + $0x20] sm:$0xff]   ;;  %v4159_v28 = vld [vmem:[#allocation2 + $0x18] sm:$0xff]   ;;  %v4161_v29 = vld [vmem:[#allocation2 + $0x50] sm:$0xff]  }
  0x17   :  { %v4164_v26 = vld [vmem:[#allocation2 + $0xa0] sm:$0xff]   ;;  %v4163_v30 = vld [vmem:[#allocation2 + $0x10] sm:$0xff]   ;;  %v4165_v31 = vld [vmem:[#allocation2 + $0x48] sm:$0xff]  }
  0x18   :  { %3988 = vmatmul.mubr.msk.bf16.vlgmr.msra.gmra.mxu0 %vm48_vm1, %v4141_v7  ;;  %3996 = vmatmul.mubr.msk.bf16.vlgmr.msra.gmra.mxu1 %vm48_vm1, %v4142_v8  ;;  %v4166_v32 = vld [vmem:[#allocation2 + $0xd8] sm:$0xff]   ;;  %v4167_v33 = vld [vmem:[#allocation2 + $0x8] sm:$0xff]   ;;  %v4169_v35 = vld [vmem:[#allocation2 + $0x40] sm:$0xff]  }
  0x19   :  { %4000 = vmatpush3.bf16.msra.mxu0 %v40_v4  ;;  %4008 = vmatpush3.bf16.msra.mxu1 %v40_v4  ;;  %v4168_v34 = vld [vmem:[#allocation2 + $0x98] sm:$0xff]   ;;  %v4170_v36 = vld [vmem:[#allocation2 + $0xd0] sm:$0xff]   ;;  %v4171_v37 = vld [vmem:[#allocation2] sm:$0xff]  }
  0x1a   :  { %4001 = vmatprep.subr.bf16.mxu0 %v4404_v0  ;;  %4009 = vmatprep.subr.bf16.mxu1 %v4404_v0  ;;  %v4172_v38 = vld [vmem:[#allocation2 + $0x90] sm:$0xff]   ;;  %v4173_v39 = vld [vmem:[#allocation2 + $0xc8] sm:$0xff]   ;;  %v4175_v41 = vld [vmem:[#allocation2 + $0xc0] sm:$0xff]  }
  0x1b   :  { %4003 = vmatprep.mubr.msk.bf16.mxu0 %vm4405_vm0, %v4404_v0  ;;  %4011 = vmatprep.mubr.msk.bf16.mxu1 %vm4405_vm0, %v4404_v0  ;;  %v4174_v40 = vld [vmem:[#allocation2 + $0x88] sm:$0xff]   ;;  %v4176_v42 = vld [vmem:[#allocation2 + $0x80] sm:$0xff]  }
  0x1c   :  { %v3417_v4 = vld [vmem:[%s4666_s3] ss:$0 sm:$0xff] }
  0x1d   :  { %4002 = vmatpush3.bf16.msra.mxu0 %v39_v6  ;;  %4010 = vmatpush3.bf16.msra.mxu1 %v39_v6 }
  0x1e   :  { %3663 = vmatprep.subr.bf16.mxu0 %v4145_v9  ;;  %3685 = vmatprep.subr.bf16.mxu1 %v4150_v12 }
  0x20   :  { %4004 = vmatmul.mubr.msk.bf16.vlgmr.msra.gmra.mxu0 %vm48_vm1, %v4143_v10  ;;  %4012 = vmatmul.mubr.msk.bf16.vlgmr.msra.gmra.mxu1 %vm48_vm1, %v4144_v11 }
  0x21   :  { %3664 = vmatpush3.bf16.msra.mxu0 %v4146_v13  ;;  %3686 = vmatpush3.bf16.msra.mxu1 %v4152_v15 }
  0x22   :  { %3665 = vmatprep.subr.bf16.mxu0 %v4147_v14  ;;  %3687 = vmatprep.subr.bf16.mxu1 %v4154_v16 }
  0x25   :  { %3666 = vmatpush3.bf16.msra.mxu0 %v4148_v17  ;;  %3688 = vmatpush3.bf16.msra.mxu1 %v4156_v19 }
  0x26   :  { %3667 = vmatprep.subr.bf16.mxu0 %v4149_v18  ;;  %3689 = vmatprep.subr.bf16.mxu1 %v4158_v20 }
  0x29   :  { %3668 = vmatpush3.bf16.msra.mxu0 %v4151_v21  ;;  %3690 = vmatpush3.bf16.msra.mxu1 %v4160_v23  ;;  %v645_v23 = vld [vmem:[%s4664_s1 + $0x28] sm:$0xf] }
  0x2a   :  { %3669 = vmatprep.subr.bf16.mxu0 %v4153_v22  ;;  %3691 = vmatprep.subr.bf16.mxu1 %v4162_v24  ;;  %v600_v22 = vld [vmem:[%s4664_s1 + $0x20] sm:$0xf]  ;;  %v4177_v24 = vld [vmem:[#allocation2 + $0x178] sm:$0xff]  }
  0x2d   :  { %3670 = vmatpush3.bf16.msra.mxu0 %v4155_v25  ;;  %3692 = vmatpush3.bf16.msra.mxu1 %v4164_v26  ;;  %v4182_v25 = vld [vmem:[#allocation2 + $0x1f8] sm:$0xff]   ;;  %v689_v26 = vld [vmem:[%s4664_s1 + $0x30] sm:$0xf] }
  0x2e   :  { %3671 = vmatprep.subr.bf16.mxu0 %v4157_v27  ;;  %3693 = vmatprep.subr.bf16.mxu1 %v4166_v32  ;;  %v733_v27 = vld [vmem:[%s4664_s1 + $0x38] sm:$0xf]  ;;  %v4180_v32 = vld [vmem:[#allocation2 + $0x130] sm:$0xff]  }
  0x31   :  { %3672 = vmatpush3.bf16.msra.mxu0 %v4159_v28  ;;  %3694 = vmatpush3.bf16.msra.mxu1 %v4168_v34  ;;  %v4178_v28 = vld [vmem:[#allocation2 + $0x138] sm:$0xff]   ;;  %v4181_v34 = vld [vmem:[#allocation2 + $0x168] sm:$0xff]  }
  0x32   :  { %3673 = vmatprep.subr.bf16.mxu0 %v4161_v29  ;;  %3695 = vmatprep.subr.bf16.mxu1 %v4170_v36  ;;  %v4184_v29 = vld [vmem:[#allocation2 + $0x1b8] sm:$0xff]   ;;  %v4183_v36 = vld [vmem:[#allocation2 + $0x128] sm:$0xff]  }
  0x35   :  { %3674 = vmatpush3.bf16.msra.mxu0 %v4163_v30  ;;  %3696 = vmatpush3.bf16.msra.mxu1 %v4172_v38  ;;  %v4179_v30 = vld [vmem:[#allocation2 + $0x170] sm:$0xff]   ;;  %v4185_v38 = vld [vmem:[#allocation2 + $0x160] sm:$0xff]  }
  0x36   :  { %3675 = vmatprep.subr.bf16.mxu0 %v4165_v31  ;;  %3697 = vmatprep.subr.bf16.mxu1 %v4173_v39  ;;  %v4186_v31 = vld [vmem:[#allocation2 + $0x1f0] sm:$0xff]   ;;  %v4194_v39 = vld [vmem:[#allocation2 + $0x1e0] sm:$0xff]  }
  0x39   :  { %3676 = vmatpush3.bf16.msra.mxu0 %v4167_v33  ;;  %3698 = vmatpush3.bf16.msra.mxu1 %v4174_v40  ;;  %v4188_v33 = vld [vmem:[#allocation2 + $0x1b0] sm:$0xff]   ;;  %v4187_v40 = vld [vmem:[#allocation2 + $0x120] sm:$0xff]  }
  0x3a   :  { %3677 = vmatprep.subr.bf16.mxu0 %v4169_v35  ;;  %3699 = vmatprep.subr.bf16.mxu1 %v4175_v41  ;;  %v4190_v35 = vld [vmem:[#allocation2 + $0x1e8] sm:$0xff]   ;;  %v4196_v41 = vld [vmem:[#allocation2 + $0x1a0] sm:$0xff]  }
  0x3d   :  { %3678 = vmatpush3.bf16.msra.mxu0 %v4171_v37  ;;  %3700 = vmatpush3.bf16.msra.mxu1 %v4176_v42  ;;  %v4192_v37 = vld [vmem:[#allocation2 + $0x1a8] sm:$0xff]   ;;  %v4189_v42 = vld [vmem:[#allocation2 + $0x158] sm:$0xff]  }
  0x3e   :  { %4015 = vmatprep.subr.bf16.mxu0 %v4404_v0  ;;  %4021 = vmatprep.subr.bf16.mxu1 %v4404_v0 }
  0xd8   :  { %v86_v43 = vpop.f32.mrf.mxu0  ;;  %v137_v44 = vpop.f32.mrf.mxu1 }
  0xda   :  { %v3989_v45 = vpop.f32.mrf.mxu0  ;;  %v3997_v46 = vpop.f32.mrf.mxu1 }
  0xdb   :  { %v4200_v45 = vld [vmem:[#allocation2 + $0x198] sm:$0xff]   ;;  %v4193_v46 = vld [vmem:[#allocation2 + $0x150] sm:$0xff]  }
  0xdc   :  { %v89_v47 = vpop.f32.mrf.mxu0  ;;  %v140_v48 = vpop.f32.mrf.mxu1 }
  0xdd   :  { %v246_v49 = vpack.c.bf16 %v89_v47, %v86_v43  ;;  %v247_v50 = vpack.c.bf16 %v140_v48, %v137_v44  ;;  %v4198_v43 = vld [vmem:[#allocation2 + $0x1d8] sm:$0xff]   ;;  %v4195_v47 = vld [vmem:[#allocation2 + $0x110] sm:$0xff]   ;;  %v4197_v48 = vld [vmem:[#allocation2 + $0x148] sm:$0xff]  }
  0xde   :  { %v3990_v51 = vpop.f32.mrf.mxu0  ;;  %v3998_v52 = vpop.f32.mrf.mxu1  ;;  %v4191_v44 = vld [vmem:[#allocation2 + $0x118] sm:$0xff]  }
  0xdf   :  { %543 = vmatprep.mubr.bf16.mxu0 %v247_v50  ;;  %v4201_v50 = vld [vmem:[#allocation2 + $0x140] sm:$0xff]   ;;  %v4202_v51 = vld [vmem:[#allocation2 + $0x1d0] sm:$0xff]  }
  0xe0   :  { %v188_v53 = vpop.f32.mrf.mxu0  ;;  %v239_v54 = vpop.f32.mrf.mxu1  ;;  %544 = vmatmul.mubr.bf16.vlgmr.msra.gmra.mxu0 %v246_v49  ;;  %v4199_v49 = vld [vmem:[#allocation2 + $0x108] sm:$0xff]   ;;  %v4203_v52 = vld [vmem:[#allocation2 + $0x100] sm:$0xff]  }
  0xe1   :  { %4017 = vmatprep.mubr.msk.bf16.mxu0 %vm4405_vm0, %v4404_v0 }
  0xe2   :  { %v4005_v55 = vpop.f32.mrf.mxu0  ;;  %v4013_v56 = vpop.f32.mrf.mxu1 }
  0xe3   :  { %v4206_v55 = vld [vmem:[#allocation2 + $0x188] sm:$0xff]   ;;  %v4207_v56 = vld [vmem:[#allocation2 + $0x1c0] sm:$0xff]  }
  0xe4   :  { %v191_v57 = vpop.f32.mrf.mxu0  ;;  %v242_v58 = vpop.f32.mrf.mxu1 }
  0xe5   :  { %v248_v59 = vpack.c.bf16 %v191_v57, %v188_v53  ;;  %v249_v60 = vpack.c.bf16 %v242_v58, %v239_v54  ;;  %v4204_v53 = vld [vmem:[#allocation2 + $0x190] sm:$0xff]   ;;  %v4205_v54 = vld [vmem:[#allocation2 + $0x1c8] sm:$0xff]   ;;  %v4208_v57 = vld [vmem:[#allocation2 + $0x180] sm:$0xff]  }
  0xe6   :  { %v4006_v61 = vpop.f32.mrf.mxu0  ;;  %v4014_v62 = vpop.f32.mrf.mxu1 }
  0xe7   :  { %584 = vmatprep.mubr.bf16.mxu1 %v249_v60 }
  0xe8   :  { %585 = vmatmul.mubr.bf16.vlgmr.msra.gmra.mxu1 %v248_v59 }
  0xe9   :  { %4023 = vmatprep.mubr.msk.bf16.mxu1 %vm4405_vm0, %v4404_v0 }
 0x1a0   :  { %v3679_v63 = vpop.f32.mrf.mxu0 }
 0x1a2   :  { %v3680_v1 = vpop.f32.mrf.mxu0 }
 0x1a3   :  { %v3681_v3 = vadd.f32 %v3680_v1, %v3679_v63 }
 0x1a4   :  { %v3682_v2 = vpop.f32.mrf.mxu0 }
 0x1a5   :  { %v546_v8 = vadd.f32 %v3681_v3, %v3417_v4 }
 0x1a6   :  { %v3683_v5 = vpop.f32.mrf.mxu0 }
 0x1a7   :  { %v3684_v9 = vadd.f32 %v3683_v5, %v3682_v2 }
 0x1a8   :  { %v3701_v6 = vpop.f32.mrf.mxu1 }
 0x1a9   :  { %v549_v14 = vadd.f32 %v3684_v9, %v3417_v4 }
 0x1aa   :  { %v3702_v7 = vpop.f32.mrf.mxu1 }
 0x1ab   :  { %v3703_v10 = vadd.f32 %v3702_v7, %v3701_v6 }
 0x1ac   :  { %v3704_v11 = vpop.f32.mrf.mxu1 }
 0x1ad   :  { %v587_v12 = vadd.f32 %v3703_v10, %v546_v8 }
 0x1ae   :  { %v3705_v13 = vpop.f32.mrf.mxu1 }
 0x1af   :  { %v3706_v15 = vadd.f32 %v3705_v13, %v3704_v11  ;;  %v595_v16 = vmul.f32 0.2, %v587_v12  ;;  %vm593_vm2 = vcmp.gt.f32.partialorder %v587_v12, 0.0 }
 0x1b1   :  { %v590_v17 = vadd.f32 %v3706_v15, %v549_v14  ;;  %v597_v19 = vsel %vm593_vm2, %v587_v12, %v595_v16 }
 0x1b3   :  { %vm594_vm3 = vcmp.gt.f32.partialorder %v590_v17, 0.0  ;;  %v596_v18 = vmul.f32 0.2, %v590_v17 }
 0x1b5   :  { %v598_v20 = vsel %vm594_vm3, %v590_v17, %v596_v18 }
 0x1b6   :  { %v599_v21 = vpack.c.bf16 %v598_v20, %v597_v19  ;;  %v3454_v20 = vld [vmem:[%s4666_s3 + $0x1] ss:$0 sm:$0xff] }
 0x1b8   :  { %4016 = vmatpush3.bf16.msra.mxu0 %v599_v21  ;;  %4022 = vmatpush3.bf16.msra.mxu1 %v599_v21 }
 0x1b9   :  { %4027 = vmatprep.subr.bf16.mxu0 %v4404_v0  ;;  %4033 = vmatprep.subr.bf16.mxu1 %v4404_v0 }
 0x1bb   :  { %4018 = vmatmul.mubr.msk.bf16.vlgmr.msra.gmra.mxu0 %vm601_vm4, %v600_v22  ;;  %4024 = vmatmul.mubr.msk.bf16.vlgmr.msra.gmra.mxu1 %vm601_vm4, %v645_v23 }
 0x1bc   :  { %4028 = vmatpush3.bf16.msra.mxu0 %v599_v21  ;;  %4034 = vmatpush3.bf16.msra.mxu1 %v599_v21 }
 0x1bd   :  { %4029 = vmatprep.mubr.msk.bf16.mxu0 %vm4405_vm0, %v4404_v0  ;;  %4035 = vmatprep.mubr.msk.bf16.mxu1 %vm4405_vm0, %v4404_v0 }
 0x1be   :  { %3715 = vmatprep.subr.bf16.mxu0 %v4177_v24  ;;  %3737 = vmatprep.subr.bf16.mxu1 %v4182_v25 }
 0x1c3   :  { %4030 = vmatmul.mubr.msk.bf16.vlgmr.msra.gmra.mxu0 %vm601_vm4, %v689_v26  ;;  %4036 = vmatmul.mubr.msk.bf16.vlgmr.msra.gmra.mxu1 %vm601_vm4, %v733_v27 }
 0x1c4   :  { %3716 = vmatpush3.bf16.msra.mxu0 %v4178_v28  ;;  %3738 = vmatpush3.bf16.msra.mxu1 %v4184_v29 }
 0x1c5   :  { %3717 = vmatprep.subr.bf16.mxu0 %v4179_v30  ;;  %3739 = vmatprep.subr.bf16.mxu1 %v4186_v31 }
 0x1c8   :  { %3718 = vmatpush3.bf16.msra.mxu0 %v4180_v32  ;;  %3740 = vmatpush3.bf16.msra.mxu1 %v4188_v33  ;;  %v1126_v32 = vld [vmem:[%s4664_s1 + $0x40] sm:$0x1]  ;;  %v1175_v33 = vld [vmem:[%s4664_s1 + $0x48] sm:$0x1] }
 0x1c9   :  { %3719 = vmatprep.subr.bf16.mxu0 %v4181_v34  ;;  %3741 = vmatprep.subr.bf16.mxu1 %v4190_v35  ;;  %v4209_v34 = vld [vmem:[#allocation2 + $0x278] sm:$0xff]  }
 0x1ca   :  { %v4214_v35 = vld [vmem:[#allocation2 + $0x2f8] sm:$0xff]  }
 0x1cc   :  { %3720 = vmatpush3.bf16.msra.mxu0 %v4183_v36  ;;  %3742 = vmatpush3.bf16.msra.mxu1 %v4192_v37  ;;  %v1219_v36 = vld [vmem:[%s4664_s1 + $0x50] sm:$0x1]  ;;  %v1263_v37 = vld [vmem:[%s4664_s1 + $0x58] sm:$0x1] }
 0x1cd   :  { %3721 = vmatprep.subr.bf16.mxu0 %v4185_v38  ;;  %3743 = vmatprep.subr.bf16.mxu1 %v4194_v39  ;;  %v4210_v38 = vld [vmem:[#allocation2 + $0x238] sm:$0xff]  }
 0x1ce   :  { %v4216_v39 = vld [vmem:[#allocation2 + $0x2b8] sm:$0xff]  }
 0x1d0   :  { %3722 = vmatpush3.bf16.msra.mxu0 %v4187_v40  ;;  %3744 = vmatpush3.bf16.msra.mxu1 %v4196_v41  ;;  %v4211_v40 = vld [vmem:[#allocation2 + $0x270] sm:$0xff]  }
 0x1d1   :  { %3723 = vmatprep.subr.bf16.mxu0 %v4189_v42  ;;  %3745 = vmatprep.subr.bf16.mxu1 %v4198_v43  ;;  %v4218_v41 = vld [vmem:[#allocation2 + $0x2f0] sm:$0xff]  }
 0x1d2   :  { %v4212_v42 = vld [vmem:[#allocation2 + $0x230] sm:$0xff]  }
 0x1d3   :  { %v4220_v43 = vld [vmem:[#allocation2 + $0x2b0] sm:$0xff]  }
 0x1d4   :  { %3724 = vmatpush3.bf16.msra.mxu0 %v4191_v44  ;;  %3746 = vmatpush3.bf16.msra.mxu1 %v4200_v45  ;;  %v4213_v44 = vld [vmem:[#allocation2 + $0x268] sm:$0xff]  }
 0x1d5   :  { %3725 = vmatprep.subr.bf16.mxu0 %v4193_v46  ;;  %3747 = vmatprep.subr.bf16.mxu1 %v4202_v51  ;;  %v4222_v45 = vld [vmem:[#allocation2 + $0x2e8] sm:$0xff]   ;;  %v4228_v51 = vld [vmem:[#allocation2 + $0x2a0] sm:$0xff]  }
 0x1d6   :  { %v4215_v46 = vld [vmem:[#allocation2 + $0x228] sm:$0xff]  }
 0x1d8   :  { %3726 = vmatpush3.bf16.msra.mxu0 %v4195_v47  ;;  %3748 = vmatpush3.bf16.msra.mxu1 %v4204_v53  ;;  %v4224_v47 = vld [vmem:[#allocation2 + $0x2a8] sm:$0xff]   ;;  %v4230_v53 = vld [vmem:[#allocation2 + $0x2d8] sm:$0xff]  }
 0x1d9   :  { %3727 = vmatprep.subr.bf16.mxu0 %v4197_v48  ;;  %3749 = vmatprep.subr.bf16.mxu1 %v4205_v54  ;;  %v4217_v48 = vld [vmem:[#allocation2 + $0x260] sm:$0xff]   ;;  %v4223_v54 = vld [vmem:[#allocation2 + $0x218] sm:$0xff]  }
 0x1dc   :  { %3728 = vmatpush3.bf16.msra.mxu0 %v4199_v49  ;;  %3750 = vmatpush3.bf16.msra.mxu1 %v4206_v55  ;;  %v4226_v49 = vld [vmem:[#allocation2 + $0x2e0] sm:$0xff]   ;;  %v4232_v55 = vld [vmem:[#allocation2 + $0x298] sm:$0xff]  }
 0x1dd   :  { %3729 = vmatprep.subr.bf16.mxu0 %v4201_v50  ;;  %3751 = vmatprep.subr.bf16.mxu1 %v4207_v56  ;;  %v4219_v50 = vld [vmem:[#allocation2 + $0x220] sm:$0xff]   ;;  %v4225_v56 = vld [vmem:[#allocation2 + $0x250] sm:$0xff]  }
 0x1e0   :  { %3730 = vmatpush3.bf16.msra.mxu0 %v4203_v52  ;;  %3752 = vmatpush3.bf16.msra.mxu1 %v4208_v57  ;;  %v4221_v52 = vld [vmem:[#allocation2 + $0x258] sm:$0xff]   ;;  %v4227_v57 = vld [vmem:[#allocation2 + $0x210] sm:$0xff]  }
 0x1e1   :  { %4039 = vmatprep.subr.bf16.mxu0 %v4404_v0  ;;  %4045 = vmatprep.subr.bf16.mxu1 %v4404_v0 }
 0x27b   :  { %v639_v58 = vpop.f32.mrf.mxu0  ;;  %v683_v59 = vpop.f32.mrf.mxu1 }
 0x27c   :  { %v777_v60 = vpack.c.bf16 %v639_v58, %v639_v58  ;;  %v778_v61 = vpack.c.bf16 %v683_v59, %v683_v59  ;;  %v4229_v58 = vld [vmem:[#allocation2 + $0x248] sm:$0xff]  }
 0x27d   :  { %v4019_v62 = vpop.f32.mrf.mxu0  ;;  %v4025_v63 = vpop.f32.mrf.mxu1  ;;  %v4231_v59 = vld [vmem:[#allocation2 + $0x208] sm:$0xff]  }
 0x27e   :  { %1074 = vmatprep.mubr.bf16.mxu0 %v778_v61  ;;  %v4234_v61 = vld [vmem:[#allocation2 + $0x2d0] sm:$0xff]   ;;  %v4235_v62 = vld [vmem:[#allocation2 + $0x200] sm:$0xff]  }
 0x27f   :  { %v642_v1 = vpop.f32.mrf.mxu0  ;;  %v686_v2 = vpop.f32.mrf.mxu1  ;;  %1075 = vmatmul.mubr.bf16.vlgmr.msra.gmra.mxu0 %v777_v60  ;;  %v4233_v60 = vld [vmem:[#allocation2 + $0x240] sm:$0xff]   ;;  %v4236_v63 = vld [vmem:[#allocation2 + $0x290] sm:$0xff]  }
 0x280   :  { %4041 = vmatprep.mubr.msk.bf16.mxu0 %vm4405_vm0, %v4404_v0  ;;  %v4237_v1 = vld [vmem:[#allocation2 + $0x2c8] sm:$0xff]  }
 0x281   :  { %v4020_v3 = vpop.f32.mrf.mxu0  ;;  %v4026_v4 = vpop.f32.mrf.mxu1  ;;  %v4238_v2 = vld [vmem:[#allocation2 + $0x288] sm:$0xff]  }
 0x282   :  { %v4239_v3 = vld [vmem:[#allocation2 + $0x2c0] sm:$0xff]  }
 0x283   :  { %v727_v5 = vpop.f32.mrf.mxu0  ;;  %v771_v6 = vpop.f32.mrf.mxu1  ;;  %v4240_v4 = vld [vmem:[#allocation2 + $0x280] sm:$0xff]  }
 0x284   :  { %v779_v7 = vpack.c.bf16 %v727_v5, %v727_v5  ;;  %v780_v8 = vpack.c.bf16 %v771_v6, %v771_v6 }
 0x285   :  { %v4031_v9 = vpop.f32.mrf.mxu0  ;;  %v4037_v10 = vpop.f32.mrf.mxu1 }
 0x286   :  { %1114 = vmatprep.mubr.bf16.mxu1 %v780_v8 }
 0x287   :  { %v730_v11 = vpop.f32.mrf.mxu0  ;;  %v774_v12 = vpop.f32.mrf.mxu1  ;;  %1115 = vmatmul.mubr.bf16.vlgmr.msra.gmra.mxu1 %v779_v7 }
 0x288   :  { %4047 = vmatprep.mubr.msk.bf16.mxu1 %vm4405_vm0, %v4404_v0 }
 0x289   :  { %v4032_v13 = vpop.f32.mrf.mxu0  ;;  %v4038_v14 = vpop.f32.mrf.mxu1 }
 0x33f   :  { %v3731_v15 = vpop.f32.mrf.mxu0 }
 0x341   :  { %v3732_v16 = vpop.f32.mrf.mxu0 }
 0x342   :  { %v3733_v19 = vadd.f32 %v3732_v16, %v3731_v15 }
 0x343   :  { %v3734_v17 = vpop.f32.mrf.mxu0 }
 0x344   :  { %v1077_v23 = vadd.f32 %v3733_v19, %v3454_v20 }
 0x345   :  { %v3735_v18 = vpop.f32.mrf.mxu0 }
 0x347   :  { %v3753_v21 = vpop.f32.mrf.mxu1 }
 0x349   :  { %v3754_v22 = vpop.f32.mrf.mxu1 }
 0x34a   :  { %v3755_v24 = vadd.f32 %v3754_v22, %v3753_v21 }
 0x34b   :  { %v3756_v25 = vpop.f32.mrf.mxu1 }
 0x34c   :  { %v1117_v26 = vadd.f32 %v3755_v24, %v1077_v23 }
 0x34d   :  { %v3757_v27 = vpop.f32.mrf.mxu1 }
 0x34e   :  { %vm1122_vm5 = vcmp.gt.f32.partialorder %v1117_v26, 0.0  ;;  %v1123_v28 = vmul.f32 0.2, %v1117_v26 }
 0x350   :  { %v1124_v29 = vsel %vm1122_vm5, %v1117_v26, %v1123_v28 }
 0x351   :  { %v1125_v30 = vpack.c.bf16 %v1124_v29, %v1124_v29 }
 0x353   :  { %v1133_v31 = vsel %vm1131_vm6, %v1125_v30, 0  ;;  %v3491_v30 = vld [vmem:[%s4666_s3 + $0x2] ss:$0 sm:$0xff] }
 0x354   :  { %4040 = vmatpush3.bf16.msra.mxu0 %v1133_v31  ;;  %4046 = vmatpush3.bf16.msra.mxu1 %v1133_v31 }
 0x355   :  { %4051 = vmatprep.subr.bf16.mxu0 %v4404_v0  ;;  %4057 = vmatprep.subr.bf16.mxu1 %v4404_v0 }
 0x357   :  { %4042 = vmatmul.mubr.msk.bf16.vlgmr.msra.gmra.mxu0 %vm1127_vm7, %v1126_v32  ;;  %4048 = vmatmul.mubr.msk.bf16.vlgmr.msra.gmra.mxu1 %vm1127_vm7, %v1175_v33 }
 0x358   :  { %4052 = vmatpush3.bf16.msra.mxu0 %v1133_v31  ;;  %4058 = vmatpush3.bf16.msra.mxu1 %v1133_v31 }
 0x359   :  { %4053 = vmatprep.mubr.msk.bf16.mxu0 %vm4405_vm0, %v4404_v0  ;;  %4059 = vmatprep.mubr.msk.bf16.mxu1 %vm4405_vm0, %v4404_v0 }
 0x35a   :  { %3767 = vmatprep.subr.bf16.mxu0 %v4209_v34  ;;  %3789 = vmatprep.subr.bf16.mxu1 %v4214_v35 }
 0x35f   :  { %4054 = vmatmul.mubr.msk.bf16.vlgmr.msra.gmra.mxu0 %vm1127_vm7, %v1219_v36  ;;  %4060 = vmatmul.mubr.msk.bf16.vlgmr.msra.gmra.mxu1 %vm1127_vm7, %v1263_v37 }
 0x360   :  { %3768 = vmatpush3.bf16.msra.mxu0 %v4210_v38  ;;  %3790 = vmatpush3.bf16.msra.mxu1 %v4216_v39 }
 0x361   :  { %3769 = vmatprep.subr.bf16.mxu0 %v4211_v40  ;;  %3791 = vmatprep.subr.bf16.mxu1 %v4218_v41  ;;  %v1654_v40 = vld [vmem:[%s4664_s1 + $0x60] sm:$0xf]  ;;  %v1703_v41 = vld [vmem:[%s4664_s1 + $0x68] sm:$0xf] }
 0x364   :  { %3770 = vmatpush3.bf16.msra.mxu0 %v4212_v42  ;;  %3792 = vmatpush3.bf16.msra.mxu1 %v4220_v43  ;;  %v4241_v42 = vld [vmem:[#allocation2 + $0x378] sm:$0xff]  }
 0x365   :  { %3771 = vmatprep.subr.bf16.mxu0 %v4213_v44  ;;  %3793 = vmatprep.subr.bf16.mxu1 %v4222_v45  ;;  %v4246_v43 = vld [vmem:[#allocation2 + $0x3f8] sm:$0xff]   ;;  %v1747_v44 = vld [vmem:[%s4664_s1 + $0x70] sm:$0xf] }
 0x366   :  { %v1791_v45 = vld [vmem:[%s4664_s1 + $0x78] sm:$0xf] }
 0x368   :  { %3772 = vmatpush3.bf16.msra.mxu0 %v4215_v46  ;;  %3794 = vmatpush3.bf16.msra.mxu1 %v4224_v47  ;;  %v4242_v46 = vld [vmem:[#allocation2 + $0x338] sm:$0xff]  }
 0x369   :  { %3773 = vmatprep.subr.bf16.mxu0 %v4217_v48  ;;  %3795 = vmatprep.subr.bf16.mxu1 %v4226_v49  ;;  %v4248_v47 = vld [vmem:[#allocation2 + $0x3b8] sm:$0xff]   ;;  %v4243_v48 = vld [vmem:[#allocation2 + $0x370] sm:$0xff]  }
 0x36a   :  { %v4250_v49 = vld [vmem:[#allocation2 + $0x3f0] sm:$0xff]  }
 0x36c   :  { %3774 = vmatpush3.bf16.msra.mxu0 %v4219_v50  ;;  %3796 = vmatpush3.bf16.msra.mxu1 %v4228_v51  ;;  %v4244_v50 = vld [vmem:[#allocation2 + $0x330] sm:$0xff]  }
 0x36d   :  { %3775 = vmatprep.subr.bf16.mxu0 %v4221_v52  ;;  %3797 = vmatprep.subr.bf16.mxu1 %v4230_v53  ;;  %v4252_v51 = vld [vmem:[#allocation2 + $0x3b0] sm:$0xff]   ;;  %v4245_v52 = vld [vmem:[#allocation2 + $0x368] sm:$0xff]  }
 0x36e   :  { %v4254_v53 = vld [vmem:[#allocation2 + $0x3e8] sm:$0xff]  }
 0x370   :  { %3776 = vmatpush3.bf16.msra.mxu0 %v4223_v54  ;;  %3798 = vmatpush3.bf16.msra.mxu1 %v4232_v55  ;;  %v4247_v54 = vld [vmem:[#allocation2 + $0x328] sm:$0xff]  }
 0x371   :  { %3777 = vmatprep.subr.bf16.mxu0 %v4225_v56  ;;  %3799 = vmatprep.subr.bf16.mxu1 %v4234_v61  ;;  %v4256_v55 = vld [vmem:[#allocation2 + $0x3a8] sm:$0xff]   ;;  %v4249_v56 = vld [vmem:[#allocation2 + $0x360] sm:$0xff]   ;;  %v4262_v61 = vld [vmem:[#allocation2 + $0x3d8] sm:$0xff]  }
 0x374   :  { %3778 = vmatpush3.bf16.msra.mxu0 %v4227_v57  ;;  %3800 = vmatpush3.bf16.msra.mxu1 %v4236_v63  ;;  %v4258_v57 = vld [vmem:[#allocation2 + $0x3e0] sm:$0xff]   ;;  %v4264_v63 = vld [vmem:[#allocation2 + $0x398] sm:$0xff]  }
 0x375   :  { %3779 = vmatprep.subr.bf16.mxu0 %v4229_v58  ;;  %3801 = vmatprep.subr.bf16.mxu1 %v4237_v1  ;;  %v4251_v58 = vld [vmem:[#allocation2 + $0x320] sm:$0xff]   ;;  %v4257_v1 = vld [vmem:[#allocation2 + $0x350] sm:$0xff]  }
 0x378   :  { %3780 = vmatpush3.bf16.msra.mxu0 %v4231_v59  ;;  %3802 = vmatpush3.bf16.msra.mxu1 %v4238_v2  ;;  %v4260_v59 = vld [vmem:[#allocation2 + $0x3a0] sm:$0xff]   ;;  %v4259_v2 = vld [vmem:[#allocation2 + $0x310] sm:$0xff]  }
 0x379   :  { %3781 = vmatprep.subr.bf16.mxu0 %v4233_v60  ;;  %3803 = vmatprep.subr.bf16.mxu1 %v4239_v3  ;;  %v4253_v60 = vld [vmem:[#allocation2 + $0x358] sm:$0xff]   ;;  %v4261_v3 = vld [vmem:[#allocation2 + $0x348] sm:$0xff]  }
 0x37c   :  { %3782 = vmatpush3.bf16.msra.mxu0 %v4235_v62  ;;  %3804 = vmatpush3.bf16.msra.mxu1 %v4240_v4  ;;  %v4255_v62 = vld [vmem:[#allocation2 + $0x318] sm:$0xff]   ;;  %v4263_v4 = vld [vmem:[#allocation2 + $0x308] sm:$0xff]  }
 0x37d   :  { %4063 = vmatprep.subr.bf16.mxu0 %v4404_v0  ;;  %4069 = vmatprep.subr.bf16.mxu1 %v4404_v0 }
 0x417   :  { %v1169_v5 = vpop.f32.mrf.mxu0  ;;  %v1213_v6 = vpop.f32.mrf.mxu1 }
 0x418   :  { %v1307_v7 = vpack.c.bf16 %v1169_v5, %v1169_v5  ;;  %v1308_v8 = vpack.c.bf16 %v1213_v6, %v1213_v6  ;;  %v4265_v5 = vld [vmem:[#allocation2 + $0x340] sm:$0xff]   ;;  %v4266_v6 = vld [vmem:[#allocation2 + $0x3d0] sm:$0xff]  }
 0x419   :  { %v4043_v9 = vpop.f32.mrf.mxu0  ;;  %v4049_v10 = vpop.f32.mrf.mxu1 }
 0x41a   :  { %1604 = vmatprep.mubr.bf16.mxu0 %v1308_v8  ;;  %v4268_v8 = vld [vmem:[#allocation2 + $0x390] sm:$0xff]   ;;  %v4269_v9 = vld [vmem:[#allocation2 + $0x3c8] sm:$0xff]  }
 0x41b   :  { %v1172_v11 = vpop.f32.mrf.mxu0  ;;  %v1216_v12 = vpop.f32.mrf.mxu1  ;;  %1605 = vmatmul.mubr.bf16.vlgmr.msra.gmra.mxu0 %v1307_v7  ;;  %v4267_v7 = vld [vmem:[#allocation2 + $0x300] sm:$0xff]   ;;  %v4270_v10 = vld [vmem:[#allocation2 + $0x388] sm:$0xff]  }
 0x41c   :  { %4065 = vmatprep.mubr.msk.bf16.mxu0 %vm4405_vm0, %v4404_v0  ;;  %v4271_v11 = vld [vmem:[#allocation2 + $0x3c0] sm:$0xff]  }
 0x41d   :  { %v4044_v13 = vpop.f32.mrf.mxu0  ;;  %v4050_v14 = vpop.f32.mrf.mxu1  ;;  %v4272_v12 = vld [vmem:[#allocation2 + $0x380] sm:$0xff]  }
 0x41f   :  { %v1257_v15 = vpop.f32.mrf.mxu0  ;;  %v1301_v16 = vpop.f32.mrf.mxu1 }
 0x420   :  { %v1309_v17 = vpack.c.bf16 %v1257_v15, %v1257_v15  ;;  %v1310_v18 = vpack.c.bf16 %v1301_v16, %v1301_v16 }
 0x421   :  { %v4055_v19 = vpop.f32.mrf.mxu0  ;;  %v4061_v20 = vpop.f32.mrf.mxu1 }
 0x422   :  { %1644 = vmatprep.mubr.bf16.mxu1 %v1310_v18 }
 0x423   :  { %v1260_v21 = vpop.f32.mrf.mxu0  ;;  %v1304_v22 = vpop.f32.mrf.mxu1  ;;  %1645 = vmatmul.mubr.bf16.vlgmr.msra.gmra.mxu1 %v1309_v17 }
 0x424   :  { %4071 = vmatprep.mubr.msk.bf16.mxu1 %vm4405_vm0, %v4404_v0 }
 0x425   :  { %v4056_v23 = vpop.f32.mrf.mxu0  ;;  %v4062_v24 = vpop.f32.mrf.mxu1 }
 0x4db   :  { %v3783_v25 = vpop.f32.mrf.mxu0 }
 0x4dd   :  { %v3784_v26 = vpop.f32.mrf.mxu0 }
 0x4de   :  { %v3785_v29 = vadd.f32 %v3784_v26, %v3783_v25 }
 0x4df   :  { %v3786_v27 = vpop.f32.mrf.mxu0 }
 0x4e0   :  { %v1607_v33 = vadd.f32 %v3785_v29, %v3491_v30 }
 0x4e1   :  { %v3787_v28 = vpop.f32.mrf.mxu0 }
 0x4e3   :  { %v3805_v31 = vpop.f32.mrf.mxu1 }
 0x4e5   :  { %v3806_v32 = vpop.f32.mrf.mxu1 }
 0x4e6   :  { %v3807_v34 = vadd.f32 %v3806_v32, %v3805_v31 }
 0x4e7   :  { %v3808_v35 = vpop.f32.mrf.mxu1 }
 0x4e8   :  { %v1647_v36 = vadd.f32 %v3807_v34, %v1607_v33 }
 0x4e9   :  { %v3809_v37 = vpop.f32.mrf.mxu1 }
 0x4ea   :  { %v1653_v38 = vpack.c.bf16 %v1647_v36, %v1647_v36  ;;  %1652 = vst [vmem:[#allocation5] sm:$0x3] %v1647_v36 }
 0x4ec   :  { %v1661_v39 = vsel %vm1659_vm8, %v1653_v38, 0  ;;  %v3528_v38 = vld [vmem:[%s4666_s3 + $0x3] ss:$0 sm:$0xff] }
 0x4ed   :  { %4064 = vmatpush3.bf16.msra.mxu0 %v1661_v39  ;;  %4070 = vmatpush3.bf16.msra.mxu1 %v1661_v39 }
 0x4ee   :  { %4075 = vmatprep.subr.bf16.mxu0 %v4404_v0  ;;  %4081 = vmatprep.subr.bf16.mxu1 %v4404_v0 }
 0x4f0   :  { %4066 = vmatmul.mubr.msk.bf16.vlgmr.msra.gmra.mxu0 %vm1655_vm9, %v1654_v40  ;;  %4072 = vmatmul.mubr.msk.bf16.vlgmr.msra.gmra.mxu1 %vm1655_vm9, %v1703_v41 }
 0x4f1   :  { %4076 = vmatpush3.bf16.msra.mxu0 %v1661_v39  ;;  %4082 = vmatpush3.bf16.msra.mxu1 %v1661_v39 }
 0x4f2   :  { %4077 = vmatprep.mubr.msk.bf16.mxu0 %vm4405_vm0, %v4404_v0  ;;  %4083 = vmatprep.mubr.msk.bf16.mxu1 %vm4405_vm0, %v4404_v0 }
 0x4f3   :  { %3819 = vmatprep.subr.bf16.mxu0 %v4241_v42  ;;  %3841 = vmatprep.subr.bf16.mxu1 %v4246_v43 }
 0x4f8   :  { %4078 = vmatmul.mubr.msk.bf16.vlgmr.msra.gmra.mxu0 %vm1655_vm9, %v1747_v44  ;;  %4084 = vmatmul.mubr.msk.bf16.vlgmr.msra.gmra.mxu1 %vm1655_vm9, %v1791_v45 }
 0x4f9   :  { %3820 = vmatpush3.bf16.msra.mxu0 %v4242_v46  ;;  %3842 = vmatpush3.bf16.msra.mxu1 %v4248_v47 }
 0x4fa   :  { %3821 = vmatprep.subr.bf16.mxu0 %v4243_v48  ;;  %3843 = vmatprep.subr.bf16.mxu1 %v4250_v49  ;;  %v4273_v49 = vld [vmem:[%s4664_s1 + $0x80] sm:$0xff]  }
 0x4fd   :  { %3822 = vmatpush3.bf16.msra.mxu0 %v4244_v50  ;;  %3844 = vmatpush3.bf16.msra.mxu1 %v4252_v51  ;;  %v4274_v50 = vld [vmem:[%s4664_s1 + $0x88] sm:$0xff]   ;;  %v4277_v51 = vld [vmem:[#allocation2 + $0x478] sm:$0xff]  }
 0x4fe   :  { %3823 = vmatprep.subr.bf16.mxu0 %v4245_v52  ;;  %3845 = vmatprep.subr.bf16.mxu1 %v4254_v53  ;;  %v4282_v52 = vld [vmem:[#allocation2 + $0x4f8] sm:$0xff]   ;;  %v4275_v53 = vld [vmem:[%s4664_s1 + $0x90] sm:$0xff]  }
 0x501   :  { %3824 = vmatpush3.bf16.msra.mxu0 %v4247_v54  ;;  %3846 = vmatpush3.bf16.msra.mxu1 %v4256_v55  ;;  %v4276_v54 = vld [vmem:[%s4664_s1 + $0x98] sm:$0xff]  }
 0x502   :  { %3825 = vmatprep.subr.bf16.mxu0 %v4249_v56  ;;  %3847 = vmatprep.subr.bf16.mxu1 %v4258_v57  ;;  %v4278_v55 = vld [vmem:[#allocation2 + $0x438] sm:$0xff]   ;;  %v4279_v57 = vld [vmem:[#allocation2 + $0x470] sm:$0xff]  }
 0x503   :  { %v4284_v56 = vld [vmem:[#allocation2 + $0x4b8] sm:$0xff]  }
 0x505   :  { %3826 = vmatpush3.bf16.msra.mxu0 %v4251_v58  ;;  %3848 = vmatpush3.bf16.msra.mxu1 %v4260_v59  ;;  %v4286_v58 = vld [vmem:[#allocation2 + $0x4f0] sm:$0xff]  }
 0x506   :  { %3827 = vmatprep.subr.bf16.mxu0 %v4253_v60  ;;  %3849 = vmatprep.subr.bf16.mxu1 %v4262_v61  ;;  %v4288_v59 = vld [vmem:[#allocation2 + $0x4b0] sm:$0xff]   ;;  %v4281_v60 = vld [vmem:[#allocation2 + $0x468] sm:$0xff]  }
 0x507   :  { %v4290_v61 = vld [vmem:[#allocation2 + $0x4e8] sm:$0xff]  }
 0x509   :  { %3828 = vmatpush3.bf16.msra.mxu0 %v4255_v62  ;;  %3850 = vmatpush3.bf16.msra.mxu1 %v4264_v63  ;;  %v4283_v62 = vld [vmem:[#allocation2 + $0x428] sm:$0xff]  }
 0x50a   :  { %3829 = vmatprep.subr.bf16.mxu0 %v4257_v1  ;;  %3851 = vmatprep.subr.bf16.mxu1 %v4266_v6  ;;  %v4292_v63 = vld [vmem:[#allocation2 + $0x4a8] sm:$0xff]   ;;  %v4285_v1 = vld [vmem:[#allocation2 + $0x460] sm:$0xff]   ;;  %v4291_v6 = vld [vmem:[#allocation2 + $0x418] sm:$0xff]  }
 0x50d   :  { %3830 = vmatpush3.bf16.msra.mxu0 %v4259_v2  ;;  %3852 = vmatpush3.bf16.msra.mxu1 %v4268_v8  ;;  %v4294_v2 = vld [vmem:[#allocation2 + $0x4e0] sm:$0xff]   ;;  %v4295_v8 = vld [vmem:[#allocation2 + $0x410] sm:$0xff]  }
 0x50e   :  { %3831 = vmatprep.subr.bf16.mxu0 %v4261_v3  ;;  %3853 = vmatprep.subr.bf16.mxu1 %v4269_v9  ;;  %v4287_v3 = vld [vmem:[#allocation2 + $0x420] sm:$0xff]   ;;  %v4297_v9 = vld [vmem:[#allocation2 + $0x448] sm:$0xff]  }
 0x511   :  { %3832 = vmatpush3.bf16.msra.mxu0 %v4263_v4  ;;  %3854 = vmatpush3.bf16.msra.mxu1 %v4270_v10  ;;  %v4296_v4 = vld [vmem:[#allocation2 + $0x4a0] sm:$0xff]   ;;  %v4298_v10 = vld [vmem:[#allocation2 + $0x4d8] sm:$0xff]  }
 0x512   :  { %3833 = vmatprep.subr.bf16.mxu0 %v4265_v5  ;;  %3855 = vmatprep.subr.bf16.mxu1 %v4271_v11  ;;  %v4289_v5 = vld [vmem:[#allocation2 + $0x458] sm:$0xff]   ;;  %v4299_v11 = vld [vmem:[#allocation2 + $0x408] sm:$0xff]  }
 0x515   :  { %3834 = vmatpush3.bf16.msra.mxu0 %v4267_v7  ;;  %3856 = vmatpush3.bf16.msra.mxu1 %v4272_v12  ;;  %v4293_v7 = vld [vmem:[#allocation2 + $0x450] sm:$0xff]   ;;  %v4300_v12 = vld [vmem:[#allocation2 + $0x498] sm:$0xff]  }
 0x516   :  { %4087 = vmatprep.subr.bf16.mxu0 %v4404_v0  ;;  %4093 = vmatprep.subr.bf16.mxu1 %v4404_v0 }
 0x5b0   :  { %v1697_v13 = vpop.f32.mrf.mxu0  ;;  %v1741_v14 = vpop.f32.mrf.mxu1 }
 0x5b1   :  { %v1835_v15 = vpack.c.bf16 %v1697_v13, %v1697_v13  ;;  %v1836_v16 = vpack.c.bf16 %v1741_v14, %v1741_v14  ;;  %v4301_v13 = vld [vmem:[#allocation2 + $0x440] sm:$0xff]   ;;  %v4302_v14 = vld [vmem:[#allocation2 + $0x4d0] sm:$0xff]  }
 0x5b2   :  { %v4067_v17 = vpop.f32.mrf.mxu0  ;;  %v4073_v18 = vpop.f32.mrf.mxu1 }
 0x5b3   :  { %2132 = vmatprep.mubr.bf16.mxu0 %v1836_v16  ;;  %v4304_v16 = vld [vmem:[#allocation2 + $0x490] sm:$0xff]   ;;  %v4305_v17 = vld [vmem:[#allocation2 + $0x4c8] sm:$0xff]  }
 0x5b4   :  { %v1700_v19 = vpop.f32.mrf.mxu0  ;;  %v1744_v20 = vpop.f32.mrf.mxu1  ;;  %2133 = vmatmul.mubr.bf16.vlgmr.msra.gmra.mxu0 %v1835_v15  ;;  %v4303_v15 = vld [vmem:[#allocation2 + $0x400] sm:$0xff]   ;;  %v4306_v18 = vld [vmem:[#allocation2 + $0x488] sm:$0xff]  }
 0x5b5   :  { %4089 = vmatprep.mubr.msk.bf16.mxu0 %vm4405_vm0, %v4404_v0  ;;  %v4307_v19 = vld [vmem:[#allocation2 + $0x4c0] sm:$0xff]  }
 0x5b6   :  { %v4068_v21 = vpop.f32.mrf.mxu0  ;;  %v4074_v22 = vpop.f32.mrf.mxu1  ;;  %v4308_v20 = vld [vmem:[#allocation2 + $0x480] sm:$0xff]  }
 0x5b8   :  { %v1785_v23 = vpop.f32.mrf.mxu0  ;;  %v1829_v24 = vpop.f32.mrf.mxu1 }
 0x5b9   :  { %v1837_v25 = vpack.c.bf16 %v1785_v23, %v1785_v23  ;;  %v1838_v26 = vpack.c.bf16 %v1829_v24, %v1829_v24 }
 0x5ba   :  { %v4079_v27 = vpop.f32.mrf.mxu0  ;;  %v4085_v28 = vpop.f32.mrf.mxu1 }
 0x5bb   :  { %2172 = vmatprep.mubr.bf16.mxu1 %v1838_v26 }
 0x5bc   :  { %v1788_v29 = vpop.f32.mrf.mxu0  ;;  %v1832_v30 = vpop.f32.mrf.mxu1  ;;  %2173 = vmatmul.mubr.bf16.vlgmr.msra.gmra.mxu1 %v1837_v25 }
 0x5bd   :  { %4095 = vmatprep.mubr.msk.bf16.mxu1 %vm4405_vm0, %v4404_v0 }
 0x5be   :  { %v4080_v31 = vpop.f32.mrf.mxu0  ;;  %v4086_v32 = vpop.f32.mrf.mxu1 }
 0x674   :  { %v3835_v33 = vpop.f32.mrf.mxu0 }
 0x676   :  { %v3836_v34 = vpop.f32.mrf.mxu0 }
 0x677   :  { %v3837_v37 = vadd.f32 %v3836_v34, %v3835_v33 }
 0x678   :  { %v3838_v35 = vpop.f32.mrf.mxu0 }
 0x679   :  { %v2135_v41 = vadd.f32 %v3837_v37, %v3528_v38 }
 0x67a   :  { %v3839_v36 = vpop.f32.mrf.mxu0 }
 0x67c   :  { %v3857_v39 = vpop.f32.mrf.mxu1 }
 0x67e   :  { %v3858_v40 = vpop.f32.mrf.mxu1 }
 0x67f   :  { %v3859_v42 = vadd.f32 %v3858_v40, %v3857_v39 }
 0x680   :  { %v3860_v43 = vpop.f32.mrf.mxu1 }
 0x681   :  { %v2175_v44 = vadd.f32 %v3859_v42, %v2135_v41  ;;  %v4309_v41 = vld [vmem:[%s4664_s1 + $0xa0] sm:$0xff]   ;;  %v4310_v42 = vld [vmem:[%s4664_s1 + $0xb0] sm:$0xff]  }
 0x682   :  { %v3861_v45 = vpop.f32.mrf.mxu1 }
 0x683   :  { %v2180_v46 = vmax.f32 %v2175_v44, 0.0 }
 0x685   :  { %v2181_v47 = vpack.c.bf16 %v2180_v46, %v2180_v46 }
 0x687   :  { %v2193_v48 = vsel %vm1131_vm6, %v2181_v47, 0 }
 0x688   :  { %4088 = vmatpush3.bf16.msra.mxu0 %v2193_v48  ;;  %4094 = vmatpush3.bf16.msra.mxu1 %v2193_v48 }
 0x689   :  { %4099 = vmatprep.subr.bf16.mxu0 %v4404_v0  ;;  %4105 = vmatprep.subr.bf16.mxu1 %v4404_v0 }
 0x68b   :  { %4090 = vmatmul.mubr.msk.bf16.vlgmr.msra.gmra.mxu0 %vm1127_vm7, %v4273_v49  ;;  %4096 = vmatmul.mubr.msk.bf16.vlgmr.msra.gmra.mxu1 %vm1127_vm7, %v4274_v50  ;;  %v3569_v49 = vld [vmem:[%s4666_s3 + $0x4] ss:$0 sm:$0xff] }
 0x68c   :  { %4100 = vmatpush3.bf16.msra.mxu0 %v2193_v48  ;;  %4106 = vmatpush3.bf16.msra.mxu1 %v2193_v48 }
 0x68d   :  { %4101 = vmatprep.mubr.msk.bf16.mxu0 %vm4405_vm0, %v4404_v0  ;;  %4107 = vmatprep.mubr.msk.bf16.mxu1 %vm4405_vm0, %v4404_v0  ;;  %v4280_v0 = vld [vmem:[#allocation2 + $0x430] sm:$0xff]  }
 0x68e   :  { %3871 = vmatprep.subr.bf16.mxu0 %v4277_v51  ;;  %3893 = vmatprep.subr.bf16.mxu1 %v4282_v52 }
 0x693   :  { %4102 = vmatmul.mubr.msk.bf16.vlgmr.msra.gmra.mxu0 %vm1127_vm7, %v4275_v53  ;;  %4108 = vmatmul.mubr.msk.bf16.vlgmr.msra.gmra.mxu1 %vm1127_vm7, %v4276_v54 }
 0x694   :  { %3872 = vmatpush3.bf16.msra.mxu0 %v4278_v55  ;;  %3894 = vmatpush3.bf16.msra.mxu1 %v4284_v56 }
 0x695   :  { %3873 = vmatprep.subr.bf16.mxu0 %v4279_v57  ;;  %3895 = vmatprep.subr.bf16.mxu1 %v4286_v58 }
 0x698   :  { %3874 = vmatpush3.bf16.msra.mxu0 %v4280_v0  ;;  %3896 = vmatpush3.bf16.msra.mxu1 %v4288_v59 }
 0x699   :  { %3875 = vmatprep.subr.bf16.mxu0 %v4281_v60  ;;  %3897 = vmatprep.subr.bf16.mxu1 %v4290_v61 }
 0x69c   :  { %3876 = vmatpush3.bf16.msra.mxu0 %v4283_v62  ;;  %3898 = vmatpush3.bf16.msra.mxu1 %v4292_v63  ;;  %v4311_v62 = vld [vmem:[%s4664_s1 + $0xa8] sm:$0xff]   ;;  %v4312_v63 = vld [vmem:[%s4664_s1 + $0xb8] sm:$0xff]  }
 0x69d   :  { %3877 = vmatprep.subr.bf16.mxu0 %v4285_v1  ;;  %3899 = vmatprep.subr.bf16.mxu1 %v4294_v2  ;;  %v4313_v1 = vld [vmem:[%s4664_s1 + $0xc0] sm:$0xff]   ;;  %v4314_v2 = vld [vmem:[%s4664_s1 + $0xd0] sm:$0xff]  }
 0x6a0   :  { %3878 = vmatpush3.bf16.msra.mxu0 %v4287_v3  ;;  %3900 = vmatpush3.bf16.msra.mxu1 %v4296_v4  ;;  %v4317_v3 = vld [vmem:[#allocation2 + $0x578] sm:$0xff]  }
 0x6a1   :  { %3879 = vmatprep.subr.bf16.mxu0 %v4289_v5  ;;  %3901 = vmatprep.subr.bf16.mxu1 %v4298_v10  ;;  %v4322_v4 = vld [vmem:[#allocation2 + $0x5f8] sm:$0xff]   ;;  %v4315_v5 = vld [vmem:[%s4664_s1 + $0xc8] sm:$0xff]   ;;  %v4326_v10 = vld [vmem:[#allocation2 + $0x5f0] sm:$0xff]  }
 0x6a4   :  { %3880 = vmatpush3.bf16.msra.mxu0 %v4291_v6  ;;  %3902 = vmatpush3.bf16.msra.mxu1 %v4300_v12  ;;  %v4316_v6 = vld [vmem:[%s4664_s1 + $0xd8] sm:$0xff]   ;;  %v4328_v12 = vld [vmem:[#allocation2 + $0x5b0] sm:$0xff]   ;;  %s4406_s1 = smov [#allocation5]  }
 0x6a5   :  { %3881 = vmatprep.subr.bf16.mxu0 %v4293_v7  ;;  %3903 = vmatprep.subr.bf16.mxu1 %v4302_v14  ;;  %v4318_v7 = vld [vmem:[#allocation2 + $0x538] sm:$0xff]   ;;  %v4330_v14 = vld [vmem:[#allocation2 + $0x5e8] sm:$0xff]   ;;  %s3396_s18 = sshll.u32 %s4406_s1, 4  ;;  %s3397_s18 = int_to_ptr.vmem [resolvable:$true] %s3396_s18 }
 0x6a6   :  { %s4377_s19 = scalar_lea.vmem %s3397_s18, 32  ;;  %p4382_p6 = scmp.lt.s32.totalorder %s3397_s18, %s3397_s18 }
 0x6a7   :  { %p4378_p5 = scmp.ne.s32.totalorder %s3397_s18, %s4377_s19  ;;  %p4383_p7 = scmp.lt.s32.totalorder %s4377_s19, %s4377_s19 }
 0x6a8   :  { %3882 = vmatpush3.bf16.msra.mxu0 %v4295_v8  ;;  %3904 = vmatpush3.bf16.msra.mxu1 %v4304_v16  ;;  %v4324_v8 = vld [vmem:[#allocation2 + $0x5b8] sm:$0xff]   ;;  %v4332_v16 = vld [vmem:[#allocation2 + $0x5a8] sm:$0xff]  }
 0x6a9   :  { %3883 = vmatprep.subr.bf16.mxu0 %v4297_v9  ;;  %3905 = vmatprep.subr.bf16.mxu1 %v4305_v17  ;;  %v4319_v9 = vld [vmem:[#allocation2 + $0x570] sm:$0xff]   ;;  %v4325_v17 = vld [vmem:[#allocation2 + $0x560] sm:$0xff]   ;;  %p4384_p8 = por %p4383_p7, %p4382_p6 }
 0x6ab   :  { %p4385_p9 = pnand %p4384_p8, %p4378_p5 }
 0x6ac   :  { %3884 = vmatpush3.bf16.msra.mxu0 %v4299_v11  ;;  %3906 = vmatpush3.bf16.msra.mxu1 %v4306_v18  ;;  %v4320_v11 = vld [vmem:[#allocation2 + $0x530] sm:$0xff]   ;;  %v4334_v18 = vld [vmem:[#allocation2 + $0x5e0] sm:$0xff]  }
 0x6ad   :  { %3885 = vmatprep.subr.bf16.mxu0 %v4301_v13  ;;  %3907 = vmatprep.subr.bf16.mxu1 %v4307_v19  ;;  %v4321_v13 = vld [vmem:[#allocation2 + $0x568] sm:$0xff]   ;;  %v4327_v19 = vld [vmem:[#allocation2 + $0x520] sm:$0xff]  }
 0x6b0   :  { %3886 = vmatpush3.bf16.msra.mxu0 %v4303_v15  ;;  %3908 = vmatpush3.bf16.msra.mxu1 %v4308_v20  ;;  %v4323_v15 = vld [vmem:[#allocation2 + $0x528] sm:$0xff]   ;;  %v4336_v20 = vld [vmem:[#allocation2 + $0x5a0] sm:$0xff]  }
 0x74b   :  { %v2229_v21 = vpop.f32.mrf.mxu0  ;;  %v2280_v22 = vpop.f32.mrf.mxu1 }
 0x74d   :  { %v4091_v23 = vpop.f32.mrf.mxu0  ;;  %v4097_v24 = vpop.f32.mrf.mxu1 }
 0x74e   :  { %v4333_v23 = vld [vmem:[#allocation2 + $0x550] sm:$0xff]  }
 0x74f   :  { %v2232_v25 = vpop.f32.mrf.mxu0  ;;  %v2283_v26 = vpop.f32.mrf.mxu1  ;;  %v4335_v24 = vld [vmem:[#allocation2 + $0x510] sm:$0xff]  }
 0x750   :  { %v2389_v27 = vpack.c.bf16 %v2232_v25, %v2229_v21  ;;  %v2390_v28 = vpack.c.bf16 %v2283_v26, %v2280_v22  ;;  %v4329_v21 = vld [vmem:[#allocation2 + $0x558] sm:$0xff]   ;;  %v4337_v25 = vld [vmem:[#allocation2 + $0x548] sm:$0xff]  }
 0x751   :  { %v4092_v29 = vpop.f32.mrf.mxu0  ;;  %v4098_v30 = vpop.f32.mrf.mxu1  ;;  %v4331_v22 = vld [vmem:[#allocation2 + $0x518] sm:$0xff]  }
 0x752   :  { %2686 = vmatprep.mubr.bf16.mxu0 %v2390_v28  ;;  %v4338_v26 = vld [vmem:[#allocation2 + $0x5d8] sm:$0xff]   ;;  %v4341_v29 = vld [vmem:[#allocation2 + $0x540] sm:$0xff]   ;;  %v4342_v30 = vld [vmem:[#allocation2 + $0x5d0] sm:$0xff]  }
 0x753   :  { %v2331_v31 = vpop.f32.mrf.mxu0  ;;  %v2382_v32 = vpop.f32.mrf.mxu1  ;;  %2687 = vmatmul.mubr.bf16.vlgmr.msra.gmra.mxu0 %v2389_v27  ;;  %v4339_v27 = vld [vmem:[#allocation2 + $0x508] sm:$0xff]   ;;  %v4340_v28 = vld [vmem:[#allocation2 + $0x598] sm:$0xff]  }
 0x754   :  { %4113 = vmatprep.mubr.msk.bf16.mxu0 %vm601_vm4, %v4309_v41 }
 0x755   :  { %v4103_v33 = vpop.f32.mrf.mxu0  ;;  %v4109_v34 = vpop.f32.mrf.mxu1 }
 0x756   :  { %v4345_v33 = vld [vmem:[#allocation2 + $0x5c8] sm:$0xff]  }
 0x757   :  { %v2334_v35 = vpop.f32.mrf.mxu0  ;;  %v2385_v36 = vpop.f32.mrf.mxu1  ;;  %v4346_v34 = vld [vmem:[#allocation2 + $0x588] sm:$0xff]  }
 0x758   :  { %v2391_v37 = vpack.c.bf16 %v2334_v35, %v2331_v31  ;;  %v2392_v38 = vpack.c.bf16 %v2385_v36, %v2382_v32  ;;  %v4343_v31 = vld [vmem:[#allocation2 + $0x500] sm:$0xff]   ;;  %v4344_v32 = vld [vmem:[#allocation2 + $0x590] sm:$0xff]  }
 0x759   :  { %v4104_v39 = vpop.f32.mrf.mxu0  ;;  %v4110_v40 = vpop.f32.mrf.mxu1  ;;  %v4347_v35 = vld [vmem:[#allocation2 + $0x5c0] sm:$0xff]  }
 0x75a   :  { %2727 = vmatprep.mubr.bf16.mxu1 %v2392_v38  ;;  %v4348_v36 = vld [vmem:[#allocation2 + $0x580] sm:$0xff]  }
 0x75b   :  { %2728 = vmatmul.mubr.bf16.vlgmr.msra.gmra.mxu1 %v2391_v37 }
 0x75c   :  { %4119 = vmatprep.mubr.msk.bf16.mxu1 %vm601_vm4, %v4310_v42 }
 0x813   :  { %v3887_v43 = vpop.f32.mrf.mxu0 }
 0x815   :  { %v3888_v44 = vpop.f32.mrf.mxu0 }
 0x816   :  { %v3889_v48 = vadd.f32 %v3888_v44, %v3887_v43 }
 0x817   :  { %v3890_v45 = vpop.f32.mrf.mxu0 }
 0x818   :  { %v2689_v54 = vadd.f32 %v3889_v48, %v3569_v49 }
 0x819   :  { %v3891_v46 = vpop.f32.mrf.mxu0 }
 0x81a   :  { %v3892_v51 = vadd.f32 %v3891_v46, %v3890_v45 }
 0x81b   :  { %v3909_v47 = vpop.f32.mrf.mxu1 }
 0x81c   :  { %v2692_v56 = vadd.f32 %v3892_v51, %v3569_v49 }
 0x81d   :  { %v3910_v50 = vpop.f32.mrf.mxu1 }
 0x81e   :  { %v3911_v52 = vadd.f32 %v3910_v50, %v3909_v47 }
 0x81f   :  { %v3912_v53 = vpop.f32.mrf.mxu1 }
 0x820   :  { %v2730_v57 = vadd.f32 %v3911_v52, %v2689_v54 }
 0x821   :  { %v3913_v55 = vpop.f32.mrf.mxu1 }
 0x822   :  { %v3914_v58 = vadd.f32 %v3913_v55, %v3912_v53  ;;  %v2736_v59 = vmax.f32 %v2730_v57, 0.0 }
 0x824   :  { %v2733_v0 = vadd.f32 %v3914_v58, %v2692_v56 }
 0x826   :  { %v2737_v60 = vmax.f32 %v2733_v0, 0.0 }
 0x828   :  { %v2738_v61 = vpack.c.bf16 %v2737_v60, %v2736_v59 }
 0x82a   :  { %4111 = vmatprep.subr.bf16.mxu0 %v2738_v61  ;;  %4117 = vmatprep.subr.bf16.mxu1 %v2738_v61 }
 0x82b   :  { %4112 = vmatpush3.bf16.msra.mxu0 %v2738_v61  ;;  %4118 = vmatpush3.bf16.msra.mxu1 %v2738_v61 }
 0x82c   :  { %4123 = vmatprep.subr.bf16.mxu0 %v2738_v61  ;;  %4129 = vmatprep.subr.bf16.mxu1 %v2738_v61 }
 0x82e   :  { %4114 = vmatmul.mubr.msk.bf16.vlgmr.msra.gmra.mxu0 %vm601_vm4, %v4311_v62  ;;  %4120 = vmatmul.mubr.msk.bf16.vlgmr.msra.gmra.mxu1 %vm601_vm4, %v4312_v63 }
 0x82f   :  { %4124 = vmatpush3.bf16.msra.mxu0 %v2738_v61  ;;  %4130 = vmatpush3.bf16.msra.mxu1 %v2738_v61 }
 0x830   :  { %4125 = vmatprep.mubr.msk.bf16.mxu0 %vm601_vm4, %v4313_v1  ;;  %4131 = vmatprep.mubr.msk.bf16.mxu1 %vm601_vm4, %v4314_v2 }
 0x831   :  { %3927 = vmatprep.subr.bf16.mxu0 %v4317_v3  ;;  %3955 = vmatprep.subr.bf16.mxu1 %v4322_v4 }
 0x836   :  { %4126 = vmatmul.mubr.msk.bf16.vlgmr.msra.gmra.mxu0 %vm601_vm4, %v4315_v5  ;;  %4132 = vmatmul.mubr.msk.bf16.vlgmr.msra.gmra.mxu1 %vm601_vm4, %v4316_v6 }
 0x837   :  { %3928 = vmatpush3.bf16.msra.mxu0 %v4318_v7  ;;  %3956 = vmatpush3.bf16.msra.mxu1 %v4324_v8 }
 0x838   :  { %3929 = vmatprep.subr.bf16.mxu0 %v4319_v9  ;;  %3957 = vmatprep.subr.bf16.mxu1 %v4326_v10 }
 0x83b   :  { %3930 = vmatpush3.bf16.msra.mxu0 %v4320_v11  ;;  %3958 = vmatpush3.bf16.msra.mxu1 %v4328_v12 }
 0x83c   :  { %3931 = vmatprep.subr.bf16.mxu0 %v4321_v13  ;;  %3959 = vmatprep.subr.bf16.mxu1 %v4330_v14 }
 0x83f   :  { %3932 = vmatpush3.bf16.msra.mxu0 %v4323_v15  ;;  %3960 = vmatpush3.bf16.msra.mxu1 %v4332_v16 }
 0x840   :  { %3933 = vmatprep.subr.bf16.mxu0 %v4325_v17  ;;  %3961 = vmatprep.subr.bf16.mxu1 %v4334_v18 }
 0x843   :  { %3934 = vmatpush3.bf16.msra.mxu0 %v4327_v19  ;;  %3962 = vmatpush3.bf16.msra.mxu1 %v4336_v20 }
 0x844   :  { %3935 = vmatprep.subr.bf16.mxu0 %v4329_v21  ;;  %3963 = vmatprep.subr.bf16.mxu1 %v4338_v26 }
 0x847   :  { %3936 = vmatpush3.bf16.msra.mxu0 %v4331_v22  ;;  %3964 = vmatpush3.bf16.msra.mxu1 %v4340_v28 }
 0x848   :  { %3937 = vmatprep.subr.bf16.mxu0 %v4333_v23  ;;  %3965 = vmatprep.subr.bf16.mxu1 %v4342_v30 }
 0x84b   :  { %3938 = vmatpush3.bf16.msra.mxu0 %v4335_v24  ;;  %3966 = vmatpush3.bf16.msra.mxu1 %v4344_v32 }
 0x84c   :  { %3939 = vmatprep.subr.bf16.mxu0 %v4337_v25  ;;  %3967 = vmatprep.subr.bf16.mxu1 %v4345_v33 }
 0x84f   :  { %3940 = vmatpush3.bf16.msra.mxu0 %v4339_v27  ;;  %3968 = vmatpush3.bf16.msra.mxu1 %v4346_v34 }
 0x850   :  { %3941 = vmatprep.subr.bf16.mxu0 %v4341_v29  ;;  %3969 = vmatprep.subr.bf16.mxu1 %v4347_v35 }
 0x853   :  { %3942 = vmatpush3.bf16.msra.mxu0 %v4343_v31  ;;  %3970 = vmatpush3.bf16.msra.mxu1 %v4348_v36 }
 0x8ee   :  { %v4115_v37 = vpop.f32.mrf.mxu0  ;;  %v4121_v38 = vpop.f32.mrf.mxu1 }
 0x8f0   :  { %v2793_v39 = vpop.f32.mrf.mxu0  ;;  %v2862_v40 = vpop.f32.mrf.mxu1 }
 0x8f2   :  { %v4116_v41 = vpop.f32.mrf.mxu0  ;;  %v4122_v42 = vpop.f32.mrf.mxu1 }
 0x8f3   :  { %v3020_v49 = vpack.c.bf16 %v4122_v42, %v4121_v38  ;;  %v3019_v58 = vpack.c.bf16 %v4116_v41, %v4115_v37 }
 0x8f4   :  { %v2796_v43 = vpop.f32.mrf.mxu0  ;;  %v2865_v44 = vpop.f32.mrf.mxu1 }
 0x8f5   :  { %v3015_v45 = vpack.c.bf16 %v2796_v43, %v2793_v39  ;;  %v3016_v46 = vpack.c.bf16 %v2865_v44, %v2862_v40 }
 0x8f6   :  { %v4127_v47 = vpop.f32.mrf.mxu0  ;;  %v4133_v48 = vpop.f32.mrf.mxu1 }
 0x8f7   :  { %3316 = vmatprep.mubr.bf16.mxu0 %v3016_v46 }
 0x8f8   :  { %v2931_v50 = vpop.f32.mrf.mxu0  ;;  %v3000_v51 = vpop.f32.mrf.mxu1  ;;  %3317 = vmatmul.mubr.bf16.vlgmr.msra.gmra.mxu0 %v3015_v45 }
 0x8f9   :  { %3324 = vmatprep.mubr.bf16.mxu0 %v3020_v49 }
 0x8fa   :  { %v4128_v52 = vpop.f32.mrf.mxu0  ;;  %v4134_v53 = vpop.f32.mrf.mxu1 }
 0x8fb   :  { %v3022_v0 = vpack.c.bf16 %v4134_v53, %v4133_v48  ;;  %v3021_v59 = vpack.c.bf16 %v4128_v52, %v4127_v47 }
 0x8fc   :  { %v2934_v54 = vpop.f32.mrf.mxu0  ;;  %v3003_v55 = vpop.f32.mrf.mxu1 }
 0x8fd   :  { %v3017_v56 = vpack.c.bf16 %v2934_v54, %v2931_v50  ;;  %v3018_v57 = vpack.c.bf16 %v3003_v55, %v3000_v51 }
 0x8ff   :  { %3365 = vmatprep.mubr.bf16.mxu1 %v3018_v57 }
 0x900   :  { %3325 = vmatmul.mubr.bf16.gmra.mxu0 %v3019_v58  ;;  %3366 = vmatmul.mubr.bf16.vlgmr.msra.gmra.mxu1 %v3017_v56 }
 0x901   :  { %3373 = vmatprep.mubr.bf16.mxu1 %v3022_v0 }
 0x908   :  { %3374 = vmatmul.mubr.bf16.gmra.mxu1 %v3021_v59 }
 0x909   :  { %4388 = shalt.err (!%p4385_p9)
}
 0x90a   :  { %3399 = dma.vmem_to_hbm [thread:$0]  %s3397_s18, 32, %s4667_s4, [#allocation4]   ;;  %v3618_v2 = vld [vmem:[%s4666_s3 + $0x5] ss:$0 sm:$0xff] }
 0x9b8   :  { %v3943_v60 = vpop.f32.mrf.mxu0 }
 0x9ba   :  { %v3944_v61 = vpop.f32.mrf.mxu0 }
 0x9bb   :  { %v3945_v1 = vadd.f32 %v3944_v61, %v3943_v60 }
 0x9bc   :  { %v3946_v62 = vpop.f32.mrf.mxu0 }
 0x9bd   :  { %v3319_v7 = vadd.f32 %v3945_v1, %v3618_v2 }
 0x9be   :  { %v3947_v63 = vpop.f32.mrf.mxu0 }
 0x9bf   :  { %v3948_v8 = vadd.f32 %v3947_v63, %v3946_v62 }
 0x9c0   :  { %v3949_v3 = vpop.f32.mrf.mxu0  ;;  %v3971_v4 = vpop.f32.mrf.mxu1 }
 0x9c1   :  { %v3322_v14 = vadd.f32 %v3948_v8, %v3618_v2 }
 0x9c2   :  { %v3950_v5 = vpop.f32.mrf.mxu0  ;;  %v3972_v6 = vpop.f32.mrf.mxu1 }
 0x9c3   :  { %v3973_v9 = vadd.f32 %v3972_v6, %v3971_v4  ;;  %v3951_v15 = vadd.f32 %v3950_v5, %v3949_v3 }
 0x9c4   :  { %v3952_v10 = vpop.f32.mrf.mxu0  ;;  %v3974_v11 = vpop.f32.mrf.mxu1 }
 0x9c5   :  { %v3368_v12 = vadd.f32 %v3973_v9, %v3319_v7  ;;  %v3327_v21 = vadd.f32 %v3951_v15, %v3618_v2 }
 0x9c6   :  { %v3975_v13 = vpop.f32.mrf.mxu1  ;;  %v3953_v17 = vpop.f32.mrf.mxu0 }
 0x9c7   :  { %4349 = vtanh.f32 %v3368_v12  ;;  %v3976_v16 = vadd.f32 %v3975_v13, %v3974_v11  ;;  %v3954_v22 = vadd.f32 %v3953_v17, %v3952_v10 }
 0x9c8   :  { %v3977_v18 = vpop.f32.mrf.mxu1 }
 0x9c9   :  { %v3371_v19 = vadd.f32 %v3976_v16, %v3322_v14  ;;  %v3330_v27 = vadd.f32 %v3954_v22, %v3618_v2 }
 0x9ca   :  { %v3978_v20 = vpop.f32.mrf.mxu1 }
 0x9cb   :  { %4351 = vtanh.f32 %v3371_v19  ;;  %v3979_v23 = vadd.f32 %v3978_v20, %v3977_v18 }
 0x9cc   :  { %v3980_v24 = vpop.f32.mrf.mxu1 }
 0x9cd   :  { %v3376_v25 = vadd.f32 %v3979_v23, %v3327_v21 }
 0x9ce   :  { %v3981_v26 = vpop.f32.mrf.mxu1 }
 0x9cf   :  { %4353 = vtanh.f32 %v3376_v25  ;;  %v3982_v28 = vadd.f32 %v3981_v26, %v3980_v24 }
 0x9d1   :  { %v3379_v29 = vadd.f32 %v3982_v28, %v3330_v27 }
 0x9d3   :  { %4355 = vtanh.f32 %v3379_v29 }
 0x9d4   :  { %v4350_v30 = vpop.eup %4349 }
 0x9d5   :  { %3386 = vst [vmem:[%s4668_s5] sm:$0xff] %v4350_v30 }
 0x9d8   :  { %v4352_v31 = vpop.eup %4351 }
 0x9d9   :  { %3387 = vst [vmem:[%s4668_s5 + $0x8] sm:$0xff] %v4352_v31 }
 0x9dc   :  { %v4354_v32 = vpop.eup %4353 }
 0x9dd   :  { %3388 = vst [vmem:[%s4668_s5 + $0x10] sm:$0xff] %v4354_v32 }
 0x9e0   :  { %v4356_v33 = vpop.eup %4355 }
 0x9e1   :  { %3389 = vst [vmem:[%s4668_s5 + $0x18] sm:$0xff] %v4356_v33 }
 0x9e2   :  { %4399 = dma.done.wait [#allocation4], 32  }
 0x9e3   :  { %4400 = vsyncadd [#allocation4], 4294967264 }
 0x9e4   :  { %3407 = vsyncpa [#allocation3], 1 }
 0x9e5   :  { %3408 = vsyncpa [#allocation4], 1 }

</bundles_post_ra>
